<compile_context>
chip_gen: v5e
topology: v5e:2x2
jax: 0.10.0
libtpu: 0.0.40
codegen_flags: <defaults>
</compile_context>

<pallas_src>
import functools

import numpy as np
import jax
import jax.numpy as jnp
from jax.experimental import pallas as pl
from jax.experimental.pallas import tpu as pltpu


_CIN_PAD = 8       # pad the 3-channel input once so layer-1 lanes = 32*8 = 256
_ROW_ALIGN = 8     # pad per-layer row counts to sublane multiples


# ---------------------------------------------------------------------------
# Fused whole-network kernel
# ---------------------------------------------------------------------------

def _fused_kernel(x_ref, *refs, n_layers, slope):
    """Whole conv stack for one image, VMEM resident.

    x_ref : (1, H, W*Cin) bf16 activation of the current image.
    refs  : for each layer (R, Wband, bias_row), then the output ref.
            R      : (4, rows_out, rows_in)    bf16 0/1 row-gather matrices
            Wband  : (4, W_in*C_in, W_out*C_out) bf16 banded weights
            bias_row: (1, W_out*C_out)          f32
    out   : (1, rows_out_last, W_out*C_out_last) f32
    """
    o_ref = refs[-1]
    p_refs = refs[:-1]

    x = x_ref[0]                                    # (rows, W*C) bf16
    for li in range(n_layers):
        r_ref = p_refs[3 * li]
        w_ref = p_refs[3 * li + 1]
        b_ref = p_refs[3 * li + 2]
        k_h = r_ref.shape[0]

        acc = None
        for ki in range(k_h):
            # Row gather (vertical kernel offset + stride + zero pad). Exact:
            # R is 0/1, so f32 accumulate then cast back to bf16 is lossless.
            g = jnp.dot(r_ref[ki], x,
                        preferred_element_type=jnp.float32).astype(jnp.bfloat16)
            # Banded weight matmul (horizontal offset + stride + channels).
            t = jnp.dot(g, w_ref[ki], preferred_element_type=jnp.float32)
            acc = t if acc is None else acc + t

        acc = acc + b_ref[...]                      # f32 bias epilogue
        if li < n_layers - 1:
            acc = jnp.where(acc >= 0.0, acc, slope * acc)   # LeakyReLU(0.2)
            x = acc.astype(jnp.bfloat16)
        else:
            o_ref[0] = acc.astype(o_ref.dtype)      # WGAN head: no activation


# ---------------------------------------------------------------------------
# Parameters
# ---------------------------------------------------------------------------

def init_conv_params(key, input_nc, ndf, n_layers=3):
    """Deterministic init (normal std=0.02, zero bias), 4x4 kernels.
    Returns PyTorch-layout params: [(w (Cout,Cin,4,4), b (Cout,), stride)]."""
    layer_cfg = [(input_nc, ndf, 2)]
    mult = 1
    for i in range(1, n_layers):
        mult_prev, mult = mult, min(2 ** i, 8)
        layer_cfg.append((ndf * mult_prev, ndf * mult, 2))
    mult_prev, mult = mult, min(2 ** n_layers, 8)
    layer_cfg.append((ndf * mult_prev, ndf * mult, 1))
    layer_cfg.append((ndf * mult, 1, 1))

    params = []
    for (cin, cout, stride) in layer_cfg:
        key, wk = jax.random.split(key)
        w = 0.02 * jax.random.normal(wk, (cout, cin, 4, 4), jnp.float32)
        b = jnp.zeros((cout,), jnp.float32)
        params.append((w, b, stride))
    return params


def _ceil_to(x, m):
    return ((x + m - 1) // m) * m


def prepare_params(raw_params, H, W, cin_pad=_CIN_PAD, row_align=_ROW_ALIGN):
    """One-time packing of conv weights into row-gather + banded matrices.

    For each layer (4x4 conv, pad=1, stride s):
      R[ki, oh, h]  = 1  iff  h == s*oh + ki - 1 (and in range)
      Wb[ki, w*Cin+c, ow*Cout+co] = W[co, c, ki, kj]  with kj = w - s*ow + 1
    Row counts are padded to multiples of `row_align` (padded rows are never
    selected downstream and are sliced off at the end).
    """
    prepared = []
    h, w = H, W          # true spatial dims of current activation
    h_rows = H           # (possibly padded) row count of current activation
    for idx, (wt, b, stride) in enumerate(raw_params):
        wt_np = np.asarray(wt, np.float32)
        b_np = np.asarray(b, np.float32)
        cout, cin, k_h, k_w = wt_np.shape
        if idx == 0 and cin < cin_pad:
            wt_np = np.pad(wt_np, ((0, 0), (0, cin_pad - cin), (0, 0), (0, 0)))
            cin = cin_pad

        h_out = (h + 2 - k_h) // stride + 1
        w_out = (w + 2 - k_w) // stride + 1
        h_out_rows = _ceil_to(h_out, row_align)

        # Row-gather matrices.
        R = np.zeros((k_h, h_out_rows, h_rows), np.float32)
        for ki in range(k_h):
            for oh in range(h_out):
                hh = stride * oh + ki - 1
                if 0 <= hh < h:
                    R[ki, oh, hh] = 1.0

        # Banded weight matrices (lane-dense output: ow*Cout + co).
        Wb = np.zeros((k_h, w * cin, w_out * cout), np.float32)
        for ki in range(k_h):
            for ow in range(w_out):
                for kj in range(k_w):
                    wc = stride * ow + kj - 1
                    if 0 <= wc < w:
                        Wb[ki, wc * cin:(wc + 1) * cin,
                           ow * cout:(ow + 1) * cout] = wt_np[:, :, ki, kj].T

        bias_row = np.tile(b_np, w_out).reshape(1, w_out * cout)

        prepared.append((jnp.asarray(R, jnp.bfloat16),
                         jnp.asarray(Wb, jnp.bfloat16),
                         jnp.asarray(bias_row, jnp.float32)))
        h, w, h_rows = h_out, w_out, h_out_rows

    meta = dict(cin_pad=cin_pad, out_h=h, out_w=w,
                out_c=int(raw_params[-1][0].shape[0]), out_rows=h_rows)
    return prepared, meta


# ---------------------------------------------------------------------------
# Forward pass (single pallas_call under one jit)
# ---------------------------------------------------------------------------

def make_forward(meta, n_layers, slope=0.2):
    cin_pad = meta['cin_pad']
    out_rows, out_h = meta['out_rows'], meta['out_h']
    out_w, out_c = meta['out_w'], meta['out_c']
    out_lanes = out_w * out_c

    kernel = functools.partial(_fused_kernel, n_layers=n_layers, slope=slope)

    @jax.jit
    def forward(params, x_nchw):
        N, C, H, W = x_nchw.shape
        # NCHW -> lane-dense (N, H, W*C) bf16 once at the boundary.
        x = jnp.transpose(x_nchw, (0, 2, 3, 1)).astype(jnp.bfloat16)
        if C < cin_pad:
            x = jnp.pad(x, ((0, 0), (0, 0), (0, 0), (0, cin_pad - C)))
        Cp = x.shape[-1]
        x2 = x.reshape(N, H, W * Cp)

        flat = []
        in_specs = [pl.BlockSpec((1, H, W * Cp), lambda n: (n, 0, 0))]
        for (R, Wb, brow) in params:
            for arr in (R, Wb, brow):
                flat.append(arr)
                in_specs.append(
                    pl.BlockSpec(arr.shape, (lambda n, nd=arr.ndim: (0,) * nd)))

        y = pl.pallas_call(
            kernel,
            out_shape=jax.ShapeDtypeStruct((N, out_rows, out_lanes),
                                           jnp.float32),
            grid_spec=pltpu.PrefetchScalarGridSpec(
                num_scalar_prefetch=0,
                grid=(N,),
                in_specs=in_specs,
                out_specs=pl.BlockSpec((1, out_rows, out_lanes),
                                       lambda n: (n, 0, 0)),
            ),
            compiler_params=pltpu.CompilerParams(
                dimension_semantics=("parallel",)),
        )(x2, *flat)

        # Drop the row padding, restore NCHW at the boundary only.
        y = y[:, :out_h, :].reshape(N, out_h, out_w, out_c)
        return jnp.transpose(y, (0, 3, 1, 2))

    return forward


# ---------------------------------------------------------------------------
# Pure-JAX f32 reference (same conv stack) for a correctness check
# ---------------------------------------------------------------------------

def reference_forward(raw_params, x, slope=0.2):
    y = x.astype(jnp.float32)
    n = len(raw_params)
    for idx, (w, b, stride) in enumerate(raw_params):
        y = jax.lax.conv_general_dilated(
            y, w, window_strides=(stride, stride),
            padding=((1, 1), (1, 1)),
            dimension_numbers=('NCHW', 'OIHW', 'NCHW'),
            precision=jax.lax.Precision.HIGHEST)
        y = y + b.reshape(1, -1, 1, 1)
        if idx < n - 1:
            y = jnp.where(y >= 0.0, y, slope * y)
    return y


if __name__ == "__main__":
    key = jax.random.PRNGKey(0)
    pkey, xkey = jax.random.split(key)

    # config['model']['output_nc'] -> 3, G_config['input_layer_output'] -> 8,
    # small test resolution 32, batch 2.
    input_nc, ndf, res, batch = 3, 8, 32, 2

    raw = init_conv_params(pkey, input_nc=input_nc, ndf=ndf, n_layers=3)
    params, meta = prepare_params(raw, res, res)
    forward = make_forward(meta, n_layers=len(params))

    x = jax.random.normal(xkey, (batch, input_nc, res, res), jnp.float32)
    y = forward(params, x)
    y = jax.block_until_ready(y)

    # critic-style output: (N, 1, 2, 2) patch scores for a 32x32 input
    assert y.shape == (batch, 1, 2, 2), y.shape

    # Numerical check vs f32 reference (bf16 operands -> generous tolerance).
    y_ref = reference_forward(raw, x)
    err = float(jnp.max(jnp.abs(y - y_ref)) / (jnp.max(jnp.abs(y_ref)) + 1e-12))
    assert err < 0.08, f"numerical mismatch: rel err {err}"

    print("KERNEL_OK")
</pallas_src>

<mosaic_0001>
module attributes {stable_mosaic.version = 11 : i64} {
  func.func @_fused_kernel(%arg0: i32, %arg1: memref<1x32x256xbf16, #tpu.memory_space<vmem>>, %arg2: memref<4x16x32xbf16, #tpu.memory_space<vmem>>, %arg3: memref<4x256x128xbf16, #tpu.memory_space<vmem>>, %arg4: memref<1x128xf32, #tpu.memory_space<vmem>>, %arg5: memref<4x8x16xbf16, #tpu.memory_space<vmem>>, %arg6: memref<4x128x128xbf16, #tpu.memory_space<vmem>>, %arg7: memref<1x128xf32, #tpu.memory_space<vmem>>, %arg8: memref<4x8x8xbf16, #tpu.memory_space<vmem>>, %arg9: memref<4x128x128xbf16, #tpu.memory_space<vmem>>, %arg10: memref<1x128xf32, #tpu.memory_space<vmem>>, %arg11: memref<4x8x8xbf16, #tpu.memory_space<vmem>>, %arg12: memref<4x128x192xbf16, #tpu.memory_space<vmem>>, %arg13: memref<1x192xf32, #tpu.memory_space<vmem>>, %arg14: memref<4x8x8xbf16, #tpu.memory_space<vmem>>, %arg15: memref<4x192x2xbf16, #tpu.memory_space<vmem>>, %arg16: memref<1x2xf32, #tpu.memory_space<vmem>>, %arg17: memref<1x8x2xf32, #tpu.memory_space<vmem>>) attributes {dimension_semantics = [#tpu.dimension_semantics<parallel>], iteration_bounds = array<i64: 2>, scalar_prefetch = 0 : i64, scratch_operands = 0 : i64, tpu.core_type = #tpu.core_type<tc>, window_params = [{transform_indices = @transform_0, window_bounds = array<i64: 1, 32, 256>}, {pipeline_mode = #tpu.pipeline_mode<synchronous>, transform_indices = @transform_1, window_bounds = array<i64: 4, 16, 32>}, {pipeline_mode = #tpu.pipeline_mode<synchronous>, transform_indices = @transform_2, window_bounds = array<i64: 4, 256, 128>}, {pipeline_mode = #tpu.pipeline_mode<synchronous>, transform_indices = @transform_3, window_bounds = array<i64: 1, 128>}, {pipeline_mode = #tpu.pipeline_mode<synchronous>, transform_indices = @transform_4, window_bounds = array<i64: 4, 8, 16>}, {pipeline_mode = #tpu.pipeline_mode<synchronous>, transform_indices = @transform_5, window_bounds = array<i64: 4, 128, 128>}, {pipeline_mode = #tpu.pipeline_mode<synchronous>, transform_indices = @transform_6, window_bounds = array<i64: 1, 128>}, {pipeline_mode = #tpu.pipeline_mode<synchronous>, transform_indices = @transform_7, window_bounds = array<i64: 4, 8, 8>}, {pipeline_mode = #tpu.pipeline_mode<synchronous>, transform_indices = @transform_8, window_bounds = array<i64: 4, 128, 128>}, {pipeline_mode = #tpu.pipeline_mode<synchronous>, transform_indices = @transform_9, window_bounds = array<i64: 1, 128>}, {pipeline_mode = #tpu.pipeline_mode<synchronous>, transform_indices = @transform_10, window_bounds = array<i64: 4, 8, 8>}, {pipeline_mode = #tpu.pipeline_mode<synchronous>, transform_indices = @transform_11, window_bounds = array<i64: 4, 128, 192>}, {pipeline_mode = #tpu.pipeline_mode<synchronous>, transform_indices = @transform_12, window_bounds = array<i64: 1, 192>}, {pipeline_mode = #tpu.pipeline_mode<synchronous>, transform_indices = @transform_13, window_bounds = array<i64: 4, 8, 8>}, {pipeline_mode = #tpu.pipeline_mode<synchronous>, transform_indices = @transform_14, window_bounds = array<i64: 4, 192, 2>}, {pipeline_mode = #tpu.pipeline_mode<synchronous>, transform_indices = @transform_15, window_bounds = array<i64: 1, 2>}, {transform_indices = @transform_16, window_bounds = array<i64: 1, 8, 2>}]} {
    %c0 = arith.constant 0 : index
    %c0_0 = arith.constant 0 : index
    %c0_1 = arith.constant 0 : index
    %0 = vector.load %arg1[%c0, %c0_0, %c0_1] : memref<1x32x256xbf16, #tpu.memory_space<vmem>>, vector<1x32x256xbf16>
    %1 = vector.shape_cast %0 : vector<1x32x256xbf16> to vector<32x256xbf16>
    %c0_2 = arith.constant 0 : index
    %c0_3 = arith.constant 0 : index
    %c0_4 = arith.constant 0 : index
    %2 = vector.load %arg2[%c0_2, %c0_3, %c0_4] : memref<4x16x32xbf16, #tpu.memory_space<vmem>>, vector<1x16x32xbf16>
    %3 = vector.shape_cast %2 : vector<1x16x32xbf16> to vector<16x32xbf16>
    %cst = arith.constant dense<0.000000e+00> : vector<16x256xf32>
    %4 = tpu.matmul %3, %1, %cst {dimension_numbers = #tpu.dot_dimension_numbers<[1], [0], [0], [1], [0, 0, 1, 1], [], []>} : vector<16x32xbf16>, vector<32x256xbf16>, vector<16x256xf32> -> vector<16x256xf32>
    %5 = arith.truncf %4 : vector<16x256xf32> to vector<16x256xbf16>
    %c0_5 = arith.constant 0 : index
    %c0_6 = arith.constant 0 : index
    %c0_7 = arith.constant 0 : index
    %6 = vector.load %arg3[%c0_5, %c0_6, %c0_7] : memref<4x256x128xbf16, #tpu.memory_space<vmem>>, vector<1x256x128xbf16>
    %7 = vector.shape_cast %6 : vector<1x256x128xbf16> to vector<256x128xbf16>
    %cst_8 = arith.constant dense<0.000000e+00> : vector<16x128xf32>
    %8 = tpu.matmul %5, %7, %cst_8 {dimension_numbers = #tpu.dot_dimension_numbers<[1], [0], [0], [1], [0, 0, 1, 1], [], []>} : vector<16x256xbf16>, vector<256x128xbf16>, vector<16x128xf32> -> vector<16x128xf32>
    %c1 = arith.constant 1 : index
    %c0_9 = arith.constant 0 : index
    %c0_10 = arith.constant 0 : index
    %9 = vector.load %arg2[%c1, %c0_9, %c0_10] : memref<4x16x32xbf16, #tpu.memory_space<vmem>>, vector<1x16x32xbf16>
    %10 = vector.shape_cast %9 : vector<1x16x32xbf16> to vector<16x32xbf16>
    %cst_11 = arith.constant dense<0.000000e+00> : vector<16x256xf32>
    %11 = tpu.matmul %10, %1, %cst_11 {dimension_numbers = #tpu.dot_dimension_numbers<[1], [0], [0], [1], [0, 0, 1, 1], [], []>} : vector<16x32xbf16>, vector<32x256xbf16>, vector<16x256xf32> -> vector<16x256xf32>
    %12 = arith.truncf %11 : vector<16x256xf32> to vector<16x256xbf16>
    %c1_12 = arith.constant 1 : index
    %c0_13 = arith.constant 0 : index
    %c0_14 = arith.constant 0 : index
    %13 = vector.load %arg3[%c1_12, %c0_13, %c0_14] : memref<4x256x128xbf16, #tpu.memory_space<vmem>>, vector<1x256x128xbf16>
    %14 = vector.shape_cast %13 : vector<1x256x128xbf16> to vector<256x128xbf16>
    %cst_15 = arith.constant dense<0.000000e+00> : vector<16x128xf32>
    %15 = tpu.matmul %12, %14, %cst_15 {dimension_numbers = #tpu.dot_dimension_numbers<[1], [0], [0], [1], [0, 0, 1, 1], [], []>} : vector<16x256xbf16>, vector<256x128xbf16>, vector<16x128xf32> -> vector<16x128xf32>
    %16 = arith.addf %8, %15 : vector<16x128xf32>
    %c2 = arith.constant 2 : index
    %c0_16 = arith.constant 0 : index
    %c0_17 = arith.constant 0 : index
    %17 = vector.load %arg2[%c2, %c0_16, %c0_17] : memref<4x16x32xbf16, #tpu.memory_space<vmem>>, vector<1x16x32xbf16>
    %18 = vector.shape_cast %17 : vector<1x16x32xbf16> to vector<16x32xbf16>
    %cst_18 = arith.constant dense<0.000000e+00> : vector<16x256xf32>
    %19 = tpu.matmul %18, %1, %cst_18 {dimension_numbers = #tpu.dot_dimension_numbers<[1], [0], [0], [1], [0, 0, 1, 1], [], []>} : vector<16x32xbf16>, vector<32x256xbf16>, vector<16x256xf32> -> vector<16x256xf32>
    %20 = arith.truncf %19 : vector<16x256xf32> to vector<16x256xbf16>
    %c2_19 = arith.constant 2 : index
    %c0_20 = arith.constant 0 : index
    %c0_21 = arith.constant 0 : index
    %21 = vector.load %arg3[%c2_19, %c0_20, %c0_21] : memref<4x256x128xbf16, #tpu.memory_space<vmem>>, vector<1x256x128xbf16>
    %22 = vector.shape_cast %21 : vector<1x256x128xbf16> to vector<256x128xbf16>
    %cst_22 = arith.constant dense<0.000000e+00> : vector<16x128xf32>
    %23 = tpu.matmul %20, %22, %cst_22 {dimension_numbers = #tpu.dot_dimension_numbers<[1], [0], [0], [1], [0, 0, 1, 1], [], []>} : vector<16x256xbf16>, vector<256x128xbf16>, vector<16x128xf32> -> vector<16x128xf32>
    %24 = arith.addf %16, %23 : vector<16x128xf32>
    %c3 = arith.constant 3 : index
    %c0_23 = arith.constant 0 : index
    %c0_24 = arith.constant 0 : index
    %25 = vector.load %arg2[%c3, %c0_23, %c0_24] : memref<4x16x32xbf16, #tpu.memory_space<vmem>>, vector<1x16x32xbf16>
    %26 = vector.shape_cast %25 : vector<1x16x32xbf16> to vector<16x32xbf16>
    %cst_25 = arith.constant dense<0.000000e+00> : vector<16x256xf32>
    %27 = tpu.matmul %26, %1, %cst_25 {dimension_numbers = #tpu.dot_dimension_numbers<[1], [0], [0], [1], [0, 0, 1, 1], [], []>} : vector<16x32xbf16>, vector<32x256xbf16>, vector<16x256xf32> -> vector<16x256xf32>
    %28 = arith.truncf %27 : vector<16x256xf32> to vector<16x256xbf16>
    %c3_26 = arith.constant 3 : index
    %c0_27 = arith.constant 0 : index
    %c0_28 = arith.constant 0 : index
    %29 = vector.load %arg3[%c3_26, %c0_27, %c0_28] : memref<4x256x128xbf16, #tpu.memory_space<vmem>>, vector<1x256x128xbf16>
    %30 = vector.shape_cast %29 : vector<1x256x128xbf16> to vector<256x128xbf16>
    %cst_29 = arith.constant dense<0.000000e+00> : vector<16x128xf32>
    %31 = tpu.matmul %28, %30, %cst_29 {dimension_numbers = #tpu.dot_dimension_numbers<[1], [0], [0], [1], [0, 0, 1, 1], [], []>} : vector<16x256xbf16>, vector<256x128xbf16>, vector<16x128xf32> -> vector<16x128xf32>
    %32 = arith.addf %24, %31 : vector<16x128xf32>
    %c0_30 = arith.constant 0 : index
    %c0_31 = arith.constant 0 : index
    %33 = vector.load %arg4[%c0_30, %c0_31] : memref<1x128xf32, #tpu.memory_space<vmem>>, vector<1x128xf32>
    %34 = vector.broadcast %33 : vector<1x128xf32> to vector<16x128xf32>
    %35 = arith.addf %32, %34 : vector<16x128xf32>
    %cst_32 = arith.constant 0.000000e+00 : f32
    %36 = vector.broadcast %cst_32 : f32 to vector<16x128xf32>
    %37 = arith.cmpf oge, %35, %36 : vector<16x128xf32>
    %cst_33 = arith.constant 2.000000e-01 : f32
    %38 = vector.broadcast %cst_33 : f32 to vector<16x128xf32>
    %39 = arith.mulf %38, %35 : vector<16x128xf32>
    %40 = arith.select %37, %35, %39 : vector<16x128xi1>, vector<16x128xf32>
    %41 = arith.truncf %40 : vector<16x128xf32> to vector<16x128xbf16>
    %c0_34 = arith.constant 0 : index
    %c0_35 = arith.constant 0 : index
    %c0_36 = arith.constant 0 : index
    %42 = vector.load %arg5[%c0_34, %c0_35, %c0_36] : memref<4x8x16xbf16, #tpu.memory_space<vmem>>, vector<1x8x16xbf16>
    %43 = vector.shape_cast %42 : vector<1x8x16xbf16> to vector<8x16xbf16>
    %cst_37 = arith.constant dense<0.000000e+00> : vector<8x128xf32>
    %44 = tpu.matmul %43, %41, %cst_37 {dimension_numbers = #tpu.dot_dimension_numbers<[1], [0], [0], [1], [0, 0, 1, 1], [], []>} : vector<8x16xbf16>, vector<16x128xbf16>, vector<8x128xf32> -> vector<8x128xf32>
    %45 = arith.truncf %44 : vector<8x128xf32> to vector<8x128xbf16>
    %c0_38 = arith.constant 0 : index
    %c0_39 = arith.constant 0 : index
    %c0_40 = arith.constant 0 : index
    %46 = vector.load %arg6[%c0_38, %c0_39, %c0_40] : memref<4x128x128xbf16, #tpu.memory_space<vmem>>, vector<1x128x128xbf16>
    %47 = vector.shape_cast %46 : vector<1x128x128xbf16> to vector<128x128xbf16>
    %cst_41 = arith.constant dense<0.000000e+00> : vector<8x128xf32>
    %48 = tpu.matmul %45, %47, %cst_41 {dimension_numbers = #tpu.dot_dimension_numbers<[1], [0], [0], [1], [0, 0, 1, 1], [], []>} : vector<8x128xbf16>, vector<128x128xbf16>, vector<8x128xf32> -> vector<8x128xf32>
    %c1_42 = arith.constant 1 : index
    %c0_43 = arith.constant 0 : index
    %c0_44 = arith.constant 0 : index
    %49 = vector.load %arg5[%c1_42, %c0_43, %c0_44] : memref<4x8x16xbf16, #tpu.memory_space<vmem>>, vector<1x8x16xbf16>
    %50 = vector.shape_cast %49 : vector<1x8x16xbf16> to vector<8x16xbf16>
    %cst_45 = arith.constant dense<0.000000e+00> : vector<8x128xf32>
    %51 = tpu.matmul %50, %41, %cst_45 {dimension_numbers = #tpu.dot_dimension_numbers<[1], [0], [0], [1], [0, 0, 1, 1], [], []>} : vector<8x16xbf16>, vector<16x128xbf16>, vector<8x128xf32> -> vector<8x128xf32>
    %52 = arith.truncf %51 : vector<8x128xf32> to vector<8x128xbf16>
    %c1_46 = arith.constant 1 : index
    %c0_47 = arith.constant 0 : index
    %c0_48 = arith.constant 0 : index
    %53 = vector.load %arg6[%c1_46, %c0_47, %c0_48] : memref<4x128x128xbf16, #tpu.memory_space<vmem>>, vector<1x128x128xbf16>
    %54 = vector.shape_cast %53 : vector<1x128x128xbf16> to vector<128x128xbf16>
    %cst_49 = arith.constant dense<0.000000e+00> : vector<8x128xf32>
    %55 = tpu.matmul %52, %54, %cst_49 {dimension_numbers = #tpu.dot_dimension_numbers<[1], [0], [0], [1], [0, 0, 1, 1], [], []>} : vector<8x128xbf16>, vector<128x128xbf16>, vector<8x128xf32> -> vector<8x128xf32>
    %56 = arith.addf %48, %55 : vector<8x128xf32>
    %c2_50 = arith.constant 2 : index
    %c0_51 = arith.constant 0 : index
    %c0_52 = arith.constant 0 : index
    %57 = vector.load %arg5[%c2_50, %c0_51, %c0_52] : memref<4x8x16xbf16, #tpu.memory_space<vmem>>, vector<1x8x16xbf16>
    %58 = vector.shape_cast %57 : vector<1x8x16xbf16> to vector<8x16xbf16>
    %cst_53 = arith.constant dense<0.000000e+00> : vector<8x128xf32>
    %59 = tpu.matmul %58, %41, %cst_53 {dimension_numbers = #tpu.dot_dimension_numbers<[1], [0], [0], [1], [0, 0, 1, 1], [], []>} : vector<8x16xbf16>, vector<16x128xbf16>, vector<8x128xf32> -> vector<8x128xf32>
    %60 = arith.truncf %59 : vector<8x128xf32> to vector<8x128xbf16>
    %c2_54 = arith.constant 2 : index
    %c0_55 = arith.constant 0 : index
    %c0_56 = arith.constant 0 : index
    %61 = vector.load %arg6[%c2_54, %c0_55, %c0_56] : memref<4x128x128xbf16, #tpu.memory_space<vmem>>, vector<1x128x128xbf16>
    %62 = vector.shape_cast %61 : vector<1x128x128xbf16> to vector<128x128xbf16>
    %cst_57 = arith.constant dense<0.000000e+00> : vector<8x128xf32>
    %63 = tpu.matmul %60, %62, %cst_57 {dimension_numbers = #tpu.dot_dimension_numbers<[1], [0], [0], [1], [0, 0, 1, 1], [], []>} : vector<8x128xbf16>, vector<128x128xbf16>, vector<8x128xf32> -> vector<8x128xf32>
    %64 = arith.addf %56, %63 : vector<8x128xf32>
    %c3_58 = arith.constant 3 : index
    %c0_59 = arith.constant 0 : index
    %c0_60 = arith.constant 0 : index
    %65 = vector.load %arg5[%c3_58, %c0_59, %c0_60] : memref<4x8x16xbf16, #tpu.memory_space<vmem>>, vector<1x8x16xbf16>
    %66 = vector.shape_cast %65 : vector<1x8x16xbf16> to vector<8x16xbf16>
    %cst_61 = arith.constant dense<0.000000e+00> : vector<8x128xf32>
    %67 = tpu.matmul %66, %41, %cst_61 {dimension_numbers = #tpu.dot_dimension_numbers<[1], [0], [0], [1], [0, 0, 1, 1], [], []>} : vector<8x16xbf16>, vector<16x128xbf16>, vector<8x128xf32> -> vector<8x128xf32>
    %68 = arith.truncf %67 : vector<8x128xf32> to vector<8x128xbf16>
    %c3_62 = arith.constant 3 : index
    %c0_63 = arith.constant 0 : index
    %c0_64 = arith.constant 0 : index
    %69 = vector.load %arg6[%c3_62, %c0_63, %c0_64] : memref<4x128x128xbf16, #tpu.memory_space<vmem>>, vector<1x128x128xbf16>
    %70 = vector.shape_cast %69 : vector<1x128x128xbf16> to vector<128x128xbf16>
    %cst_65 = arith.constant dense<0.000000e+00> : vector<8x128xf32>
    %71 = tpu.matmul %68, %70, %cst_65 {dimension_numbers = #tpu.dot_dimension_numbers<[1], [0], [0], [1], [0, 0, 1, 1], [], []>} : vector<8x128xbf16>, vector<128x128xbf16>, vector<8x128xf32> -> vector<8x128xf32>
    %72 = arith.addf %64, %71 : vector<8x128xf32>
    %c0_66 = arith.constant 0 : index
    %c0_67 = arith.constant 0 : index
    %73 = vector.load %arg7[%c0_66, %c0_67] : memref<1x128xf32, #tpu.memory_space<vmem>>, vector<1x128xf32>
    %74 = vector.broadcast %73 : vector<1x128xf32> to vector<8x128xf32>
    %75 = arith.addf %72, %74 : vector<8x128xf32>
    %cst_68 = arith.constant 0.000000e+00 : f32
    %76 = vector.broadcast %cst_68 : f32 to vector<8x128xf32>
    %77 = arith.cmpf oge, %75, %76 : vector<8x128xf32>
    %cst_69 = arith.constant 2.000000e-01 : f32
    %78 = vector.broadcast %cst_69 : f32 to vector<8x128xf32>
    %79 = arith.mulf %78, %75 : vector<8x128xf32>
    %80 = arith.select %77, %75, %79 : vector<8x128xi1>, vector<8x128xf32>
    %81 = arith.truncf %80 : vector<8x128xf32> to vector<8x128xbf16>
    %c0_70 = arith.constant 0 : index
    %c0_71 = arith.constant 0 : index
    %c0_72 = arith.constant 0 : index
    %82 = vector.load %arg8[%c0_70, %c0_71, %c0_72] : memref<4x8x8xbf16, #tpu.memory_space<vmem>>, vector<1x8x8xbf16>
    %83 = vector.shape_cast %82 : vector<1x8x8xbf16> to vector<8x8xbf16>
    %cst_73 = arith.constant dense<0.000000e+00> : vector<8x128xf32>
    %84 = tpu.matmul %83, %81, %cst_73 {dimension_numbers = #tpu.dot_dimension_numbers<[1], [0], [0], [1], [0, 0, 1, 1], [], []>} : vector<8x8xbf16>, vector<8x128xbf16>, vector<8x128xf32> -> vector<8x128xf32>
    %85 = arith.truncf %84 : vector<8x128xf32> to vector<8x128xbf16>
    %c0_74 = arith.constant 0 : index
    %c0_75 = arith.constant 0 : index
    %c0_76 = arith.constant 0 : index
    %86 = vector.load %arg9[%c0_74, %c0_75, %c0_76] : memref<4x128x128xbf16, #tpu.memory_space<vmem>>, vector<1x128x128xbf16>
    %87 = vector.shape_cast %86 : vector<1x128x128xbf16> to vector<128x128xbf16>
    %cst_77 = arith.constant dense<0.000000e+00> : vector<8x128xf32>
    %88 = tpu.matmul %85, %87, %cst_77 {dimension_numbers = #tpu.dot_dimension_numbers<[1], [0], [0], [1], [0, 0, 1, 1], [], []>} : vector<8x128xbf16>, vector<128x128xbf16>, vector<8x128xf32> -> vector<8x128xf32>
    %c1_78 = arith.constant 1 : index
    %c0_79 = arith.constant 0 : index
    %c0_80 = arith.constant 0 : index
    %89 = vector.load %arg8[%c1_78, %c0_79, %c0_80] : memref<4x8x8xbf16, #tpu.memory_space<vmem>>, vector<1x8x8xbf16>
    %90 = vector.shape_cast %89 : vector<1x8x8xbf16> to vector<8x8xbf16>
    %cst_81 = arith.constant dense<0.000000e+00> : vector<8x128xf32>
    %91 = tpu.matmul %90, %81, %cst_81 {dimension_numbers = #tpu.dot_dimension_numbers<[1], [0], [0], [1], [0, 0, 1, 1], [], []>} : vector<8x8xbf16>, vector<8x128xbf16>, vector<8x128xf32> -> vector<8x128xf32>
    %92 = arith.truncf %91 : vector<8x128xf32> to vector<8x128xbf16>
    %c1_82 = arith.constant 1 : index
    %c0_83 = arith.constant 0 : index
    %c0_84 = arith.constant 0 : index
    %93 = vector.load %arg9[%c1_82, %c0_83, %c0_84] : memref<4x128x128xbf16, #tpu.memory_space<vmem>>, vector<1x128x128xbf16>
    %94 = vector.shape_cast %93 : vector<1x128x128xbf16> to vector<128x128xbf16>
    %cst_85 = arith.constant dense<0.000000e+00> : vector<8x128xf32>
    %95 = tpu.matmul %92, %94, %cst_85 {dimension_numbers = #tpu.dot_dimension_numbers<[1], [0], [0], [1], [0, 0, 1, 1], [], []>} : vector<8x128xbf16>, vector<128x128xbf16>, vector<8x128xf32> -> vector<8x128xf32>
    %96 = arith.addf %88, %95 : vector<8x128xf32>
    %c2_86 = arith.constant 2 : index
    %c0_87 = arith.constant 0 : index
    %c0_88 = arith.constant 0 : index
    %97 = vector.load %arg8[%c2_86, %c0_87, %c0_88] : memref<4x8x8xbf16, #tpu.memory_space<vmem>>, vector<1x8x8xbf16>
    %98 = vector.shape_cast %97 : vector<1x8x8xbf16> to vector<8x8xbf16>
    %cst_89 = arith.constant dense<0.000000e+00> : vector<8x128xf32>
    %99 = tpu.matmul %98, %81, %cst_89 {dimension_numbers = #tpu.dot_dimension_numbers<[1], [0], [0], [1], [0, 0, 1, 1], [], []>} : vector<8x8xbf16>, vector<8x128xbf16>, vector<8x128xf32> -> vector<8x128xf32>
    %100 = arith.truncf %99 : vector<8x128xf32> to vector<8x128xbf16>
    %c2_90 = arith.constant 2 : index
    %c0_91 = arith.constant 0 : index
    %c0_92 = arith.constant 0 : index
    %101 = vector.load %arg9[%c2_90, %c0_91, %c0_92] : memref<4x128x128xbf16, #tpu.memory_space<vmem>>, vector<1x128x128xbf16>
    %102 = vector.shape_cast %101 : vector<1x128x128xbf16> to vector<128x128xbf16>
    %cst_93 = arith.constant dense<0.000000e+00> : vector<8x128xf32>
    %103 = tpu.matmul %100, %102, %cst_93 {dimension_numbers = #tpu.dot_dimension_numbers<[1], [0], [0], [1], [0, 0, 1, 1], [], []>} : vector<8x128xbf16>, vector<128x128xbf16>, vector<8x128xf32> -> vector<8x128xf32>
    %104 = arith.addf %96, %103 : vector<8x128xf32>
    %c3_94 = arith.constant 3 : index
    %c0_95 = arith.constant 0 : index
    %c0_96 = arith.constant 0 : index
    %105 = vector.load %arg8[%c3_94, %c0_95, %c0_96] : memref<4x8x8xbf16, #tpu.memory_space<vmem>>, vector<1x8x8xbf16>
    %106 = vector.shape_cast %105 : vector<1x8x8xbf16> to vector<8x8xbf16>
    %cst_97 = arith.constant dense<0.000000e+00> : vector<8x128xf32>
    %107 = tpu.matmul %106, %81, %cst_97 {dimension_numbers = #tpu.dot_dimension_numbers<[1], [0], [0], [1], [0, 0, 1, 1], [], []>} : vector<8x8xbf16>, vector<8x128xbf16>, vector<8x128xf32> -> vector<8x128xf32>
    %108 = arith.truncf %107 : vector<8x128xf32> to vector<8x128xbf16>
    %c3_98 = arith.constant 3 : index
    %c0_99 = arith.constant 0 : index
    %c0_100 = arith.constant 0 : index
    %109 = vector.load %arg9[%c3_98, %c0_99, %c0_100] : memref<4x128x128xbf16, #tpu.memory_space<vmem>>, vector<1x128x128xbf16>
    %110 = vector.shape_cast %109 : vector<1x128x128xbf16> to vector<128x128xbf16>
    %cst_101 = arith.constant dense<0.000000e+00> : vector<8x128xf32>
    %111 = tpu.matmul %108, %110, %cst_101 {dimension_numbers = #tpu.dot_dimension_numbers<[1], [0], [0], [1], [0, 0, 1, 1], [], []>} : vector<8x128xbf16>, vector<128x128xbf16>, vector<8x128xf32> -> vector<8x128xf32>
    %112 = arith.addf %104, %111 : vector<8x128xf32>
    %c0_102 = arith.constant 0 : index
    %c0_103 = arith.constant 0 : index
    %113 = vector.load %arg10[%c0_102, %c0_103] : memref<1x128xf32, #tpu.memory_space<vmem>>, vector<1x128xf32>
    %114 = vector.broadcast %113 : vector<1x128xf32> to vector<8x128xf32>
    %115 = arith.addf %112, %114 : vector<8x128xf32>
    %cst_104 = arith.constant 0.000000e+00 : f32
    %116 = vector.broadcast %cst_104 : f32 to vector<8x128xf32>
    %117 = arith.cmpf oge, %115, %116 : vector<8x128xf32>
    %cst_105 = arith.constant 2.000000e-01 : f32
    %118 = vector.broadcast %cst_105 : f32 to vector<8x128xf32>
    %119 = arith.mulf %118, %115 : vector<8x128xf32>
    %120 = arith.select %117, %115, %119 : vector<8x128xi1>, vector<8x128xf32>
    %121 = arith.truncf %120 : vector<8x128xf32> to vector<8x128xbf16>
    %c0_106 = arith.constant 0 : index
    %c0_107 = arith.constant 0 : index
    %c0_108 = arith.constant 0 : index
    %122 = vector.load %arg11[%c0_106, %c0_107, %c0_108] : memref<4x8x8xbf16, #tpu.memory_space<vmem>>, vector<1x8x8xbf16>
    %123 = vector.shape_cast %122 : vector<1x8x8xbf16> to vector<8x8xbf16>
    %cst_109 = arith.constant dense<0.000000e+00> : vector<8x128xf32>
    %124 = tpu.matmul %123, %121, %cst_109 {dimension_numbers = #tpu.dot_dimension_numbers<[1], [0], [0], [1], [0, 0, 1, 1], [], []>} : vector<8x8xbf16>, vector<8x128xbf16>, vector<8x128xf32> -> vector<8x128xf32>
    %125 = arith.truncf %124 : vector<8x128xf32> to vector<8x128xbf16>
    %c0_110 = arith.constant 0 : index
    %c0_111 = arith.constant 0 : index
    %c0_112 = arith.constant 0 : index
    %126 = vector.load %arg12[%c0_110, %c0_111, %c0_112] : memref<4x128x192xbf16, #tpu.memory_space<vmem>>, vector<1x128x192xbf16>
    %127 = vector.shape_cast %126 : vector<1x128x192xbf16> to vector<128x192xbf16>
    %cst_113 = arith.constant dense<0.000000e+00> : vector<8x192xf32>
    %128 = tpu.matmul %125, %127, %cst_113 {dimension_numbers = #tpu.dot_dimension_numbers<[1], [0], [0], [1], [0, 0, 1, 1], [], []>} : vector<8x128xbf16>, vector<128x192xbf16>, vector<8x192xf32> -> vector<8x192xf32>
    %c1_114 = arith.constant 1 : index
    %c0_115 = arith.constant 0 : index
    %c0_116 = arith.constant 0 : index
    %129 = vector.load %arg11[%c1_114, %c0_115, %c0_116] : memref<4x8x8xbf16, #tpu.memory_space<vmem>>, vector<1x8x8xbf16>
    %130 = vector.shape_cast %129 : vector<1x8x8xbf16> to vector<8x8xbf16>
    %cst_117 = arith.constant dense<0.000000e+00> : vector<8x128xf32>
    %131 = tpu.matmul %130, %121, %cst_117 {dimension_numbers = #tpu.dot_dimension_numbers<[1], [0], [0], [1], [0, 0, 1, 1], [], []>} : vector<8x8xbf16>, vector<8x128xbf16>, vector<8x128xf32> -> vector<8x128xf32>
    %132 = arith.truncf %131 : vector<8x128xf32> to vector<8x128xbf16>
    %c1_118 = arith.constant 1 : index
    %c0_119 = arith.constant 0 : index
    %c0_120 = arith.constant 0 : index
    %133 = vector.load %arg12[%c1_118, %c0_119, %c0_120] : memref<4x128x192xbf16, #tpu.memory_space<vmem>>, vector<1x128x192xbf16>
    %134 = vector.shape_cast %133 : vector<1x128x192xbf16> to vector<128x192xbf16>
    %cst_121 = arith.constant dense<0.000000e+00> : vector<8x192xf32>
    %135 = tpu.matmul %132, %134, %cst_121 {dimension_numbers = #tpu.dot_dimension_numbers<[1], [0], [0], [1], [0, 0, 1, 1], [], []>} : vector<8x128xbf16>, vector<128x192xbf16>, vector<8x192xf32> -> vector<8x192xf32>
    %136 = arith.addf %128, %135 : vector<8x192xf32>
    %c2_122 = arith.constant 2 : index
    %c0_123 = arith.constant 0 : index
    %c0_124 = arith.constant 0 : index
    %137 = vector.load %arg11[%c2_122, %c0_123, %c0_124] : memref<4x8x8xbf16, #tpu.memory_space<vmem>>, vector<1x8x8xbf16>
    %138 = vector.shape_cast %137 : vector<1x8x8xbf16> to vector<8x8xbf16>
    %cst_125 = arith.constant dense<0.000000e+00> : vector<8x128xf32>
    %139 = tpu.matmul %138, %121, %cst_125 {dimension_numbers = #tpu.dot_dimension_numbers<[1], [0], [0], [1], [0, 0, 1, 1], [], []>} : vector<8x8xbf16>, vector<8x128xbf16>, vector<8x128xf32> -> vector<8x128xf32>
    %140 = arith.truncf %139 : vector<8x128xf32> to vector<8x128xbf16>
    %c2_126 = arith.constant 2 : index
    %c0_127 = arith.constant 0 : index
    %c0_128 = arith.constant 0 : index
    %141 = vector.load %arg12[%c2_126, %c0_127, %c0_128] : memref<4x128x192xbf16, #tpu.memory_space<vmem>>, vector<1x128x192xbf16>
    %142 = vector.shape_cast %141 : vector<1x128x192xbf16> to vector<128x192xbf16>
    %cst_129 = arith.constant dense<0.000000e+00> : vector<8x192xf32>
    %143 = tpu.matmul %140, %142, %cst_129 {dimension_numbers = #tpu.dot_dimension_numbers<[1], [0], [0], [1], [0, 0, 1, 1], [], []>} : vector<8x128xbf16>, vector<128x192xbf16>, vector<8x192xf32> -> vector<8x192xf32>
    %144 = arith.addf %136, %143 : vector<8x192xf32>
    %c3_130 = arith.constant 3 : index
    %c0_131 = arith.constant 0 : index
    %c0_132 = arith.constant 0 : index
    %145 = vector.load %arg11[%c3_130, %c0_131, %c0_132] : memref<4x8x8xbf16, #tpu.memory_space<vmem>>, vector<1x8x8xbf16>
    %146 = vector.shape_cast %145 : vector<1x8x8xbf16> to vector<8x8xbf16>
    %cst_133 = arith.constant dense<0.000000e+00> : vector<8x128xf32>
    %147 = tpu.matmul %146, %121, %cst_133 {dimension_numbers = #tpu.dot_dimension_numbers<[1], [0], [0], [1], [0, 0, 1, 1], [], []>} : vector<8x8xbf16>, vector<8x128xbf16>, vector<8x128xf32> -> vector<8x128xf32>
    %148 = arith.truncf %147 : vector<8x128xf32> to vector<8x128xbf16>
    %c3_134 = arith.constant 3 : index
    %c0_135 = arith.constant 0 : index
    %c0_136 = arith.constant 0 : index
    %149 = vector.load %arg12[%c3_134, %c0_135, %c0_136] : memref<4x128x192xbf16, #tpu.memory_space<vmem>>, vector<1x128x192xbf16>
    %150 = vector.shape_cast %149 : vector<1x128x192xbf16> to vector<128x192xbf16>
    %cst_137 = arith.constant dense<0.000000e+00> : vector<8x192xf32>
    %151 = tpu.matmul %148, %150, %cst_137 {dimension_numbers = #tpu.dot_dimension_numbers<[1], [0], [0], [1], [0, 0, 1, 1], [], []>} : vector<8x128xbf16>, vector<128x192xbf16>, vector<8x192xf32> -> vector<8x192xf32>
    %152 = arith.addf %144, %151 : vector<8x192xf32>
    %c0_138 = arith.constant 0 : index
    %c0_139 = arith.constant 0 : index
    %153 = vector.load %arg13[%c0_138, %c0_139] : memref<1x192xf32, #tpu.memory_space<vmem>>, vector<1x192xf32>
    %154 = vector.broadcast %153 : vector<1x192xf32> to vector<8x192xf32>
    %155 = arith.addf %152, %154 : vector<8x192xf32>
    %cst_140 = arith.constant 0.000000e+00 : f32
    %156 = vector.broadcast %cst_140 : f32 to vector<8x192xf32>
    %157 = arith.cmpf oge, %155, %156 : vector<8x192xf32>
    %cst_141 = arith.constant 2.000000e-01 : f32
    %158 = vector.broadcast %cst_141 : f32 to vector<8x192xf32>
    %159 = arith.mulf %158, %155 : vector<8x192xf32>
    %160 = arith.select %157, %155, %159 : vector<8x192xi1>, vector<8x192xf32>
    %161 = arith.truncf %160 : vector<8x192xf32> to vector<8x192xbf16>
    %c0_142 = arith.constant 0 : index
    %c0_143 = arith.constant 0 : index
    %c0_144 = arith.constant 0 : index
    %162 = vector.load %arg14[%c0_142, %c0_143, %c0_144] : memref<4x8x8xbf16, #tpu.memory_space<vmem>>, vector<1x8x8xbf16>
    %163 = vector.shape_cast %162 : vector<1x8x8xbf16> to vector<8x8xbf16>
    %cst_145 = arith.constant dense<0.000000e+00> : vector<8x192xf32>
    %164 = tpu.matmul %163, %161, %cst_145 {dimension_numbers = #tpu.dot_dimension_numbers<[1], [0], [0], [1], [0, 0, 1, 1], [], []>} : vector<8x8xbf16>, vector<8x192xbf16>, vector<8x192xf32> -> vector<8x192xf32>
    %165 = arith.truncf %164 : vector<8x192xf32> to vector<8x192xbf16>
    %c0_146 = arith.constant 0 : index
    %c0_147 = arith.constant 0 : index
    %c0_148 = arith.constant 0 : index
    %166 = vector.load %arg15[%c0_146, %c0_147, %c0_148] : memref<4x192x2xbf16, #tpu.memory_space<vmem>>, vector<1x192x2xbf16>
    %167 = vector.shape_cast %166 : vector<1x192x2xbf16> to vector<192x2xbf16>
    %cst_149 = arith.constant dense<0.000000e+00> : vector<8x2xf32>
    %168 = tpu.matmul %165, %167, %cst_149 {dimension_numbers = #tpu.dot_dimension_numbers<[1], [0], [0], [1], [0, 0, 1, 1], [], []>} : vector<8x192xbf16>, vector<192x2xbf16>, vector<8x2xf32> -> vector<8x2xf32>
    %c1_150 = arith.constant 1 : index
    %c0_151 = arith.constant 0 : index
    %c0_152 = arith.constant 0 : index
    %169 = vector.load %arg14[%c1_150, %c0_151, %c0_152] : memref<4x8x8xbf16, #tpu.memory_space<vmem>>, vector<1x8x8xbf16>
    %170 = vector.shape_cast %169 : vector<1x8x8xbf16> to vector<8x8xbf16>
    %cst_153 = arith.constant dense<0.000000e+00> : vector<8x192xf32>
    %171 = tpu.matmul %170, %161, %cst_153 {dimension_numbers = #tpu.dot_dimension_numbers<[1], [0], [0], [1], [0, 0, 1, 1], [], []>} : vector<8x8xbf16>, vector<8x192xbf16>, vector<8x192xf32> -> vector<8x192xf32>
    %172 = arith.truncf %171 : vector<8x192xf32> to vector<8x192xbf16>
    %c1_154 = arith.constant 1 : index
    %c0_155 = arith.constant 0 : index
    %c0_156 = arith.constant 0 : index
    %173 = vector.load %arg15[%c1_154, %c0_155, %c0_156] : memref<4x192x2xbf16, #tpu.memory_space<vmem>>, vector<1x192x2xbf16>
    %174 = vector.shape_cast %173 : vector<1x192x2xbf16> to vector<192x2xbf16>
    %cst_157 = arith.constant dense<0.000000e+00> : vector<8x2xf32>
    %175 = tpu.matmul %172, %174, %cst_157 {dimension_numbers = #tpu.dot_dimension_numbers<[1], [0], [0], [1], [0, 0, 1, 1], [], []>} : vector<8x192xbf16>, vector<192x2xbf16>, vector<8x2xf32> -> vector<8x2xf32>
    %176 = arith.addf %168, %175 : vector<8x2xf32>
    %c2_158 = arith.constant 2 : index
    %c0_159 = arith.constant 0 : index
    %c0_160 = arith.constant 0 : index
    %177 = vector.load %arg14[%c2_158, %c0_159, %c0_160] : memref<4x8x8xbf16, #tpu.memory_space<vmem>>, vector<1x8x8xbf16>
    %178 = vector.shape_cast %177 : vector<1x8x8xbf16> to vector<8x8xbf16>
    %cst_161 = arith.constant dense<0.000000e+00> : vector<8x192xf32>
    %179 = tpu.matmul %178, %161, %cst_161 {dimension_numbers = #tpu.dot_dimension_numbers<[1], [0], [0], [1], [0, 0, 1, 1], [], []>} : vector<8x8xbf16>, vector<8x192xbf16>, vector<8x192xf32> -> vector<8x192xf32>
    %180 = arith.truncf %179 : vector<8x192xf32> to vector<8x192xbf16>
    %c2_162 = arith.constant 2 : index
    %c0_163 = arith.constant 0 : index
    %c0_164 = arith.constant 0 : index
    %181 = vector.load %arg15[%c2_162, %c0_163, %c0_164] : memref<4x192x2xbf16, #tpu.memory_space<vmem>>, vector<1x192x2xbf16>
    %182 = vector.shape_cast %181 : vector<1x192x2xbf16> to vector<192x2xbf16>
    %cst_165 = arith.constant dense<0.000000e+00> : vector<8x2xf32>
    %183 = tpu.matmul %180, %182, %cst_165 {dimension_numbers = #tpu.dot_dimension_numbers<[1], [0], [0], [1], [0, 0, 1, 1], [], []>} : vector<8x192xbf16>, vector<192x2xbf16>, vector<8x2xf32> -> vector<8x2xf32>
    %184 = arith.addf %176, %183 : vector<8x2xf32>
    %c3_166 = arith.constant 3 : index
    %c0_167 = arith.constant 0 : index
    %c0_168 = arith.constant 0 : index
    %185 = vector.load %arg14[%c3_166, %c0_167, %c0_168] : memref<4x8x8xbf16, #tpu.memory_space<vmem>>, vector<1x8x8xbf16>
    %186 = vector.shape_cast %185 : vector<1x8x8xbf16> to vector<8x8xbf16>
    %cst_169 = arith.constant dense<0.000000e+00> : vector<8x192xf32>
    %187 = tpu.matmul %186, %161, %cst_169 {dimension_numbers = #tpu.dot_dimension_numbers<[1], [0], [0], [1], [0, 0, 1, 1], [], []>} : vector<8x8xbf16>, vector<8x192xbf16>, vector<8x192xf32> -> vector<8x192xf32>
    %188 = arith.truncf %187 : vector<8x192xf32> to vector<8x192xbf16>
    %c3_170 = arith.constant 3 : index
    %c0_171 = arith.constant 0 : index
    %c0_172 = arith.constant 0 : index
    %189 = vector.load %arg15[%c3_170, %c0_171, %c0_172] : memref<4x192x2xbf16, #tpu.memory_space<vmem>>, vector<1x192x2xbf16>
    %190 = vector.shape_cast %189 : vector<1x192x2xbf16> to vector<192x2xbf16>
    %cst_173 = arith.constant dense<0.000000e+00> : vector<8x2xf32>
    %191 = tpu.matmul %188, %190, %cst_173 {dimension_numbers = #tpu.dot_dimension_numbers<[1], [0], [0], [1], [0, 0, 1, 1], [], []>} : vector<8x192xbf16>, vector<192x2xbf16>, vector<8x2xf32> -> vector<8x2xf32>
    %192 = arith.addf %184, %191 : vector<8x2xf32>
    %c0_174 = arith.constant 0 : index
    %c0_175 = arith.constant 0 : index
    %193 = vector.load %arg16[%c0_174, %c0_175] : memref<1x2xf32, #tpu.memory_space<vmem>>, vector<1x2xf32>
    %194 = vector.broadcast %193 : vector<1x2xf32> to vector<8x2xf32>
    %195 = arith.addf %192, %194 : vector<8x2xf32>
    %c0_176 = arith.constant 0 : index
    %c0_177 = arith.constant 0 : index
    %c0_178 = arith.constant 0 : index
    %196 = vector.load %arg17[%c0_176, %c0_177, %c0_178] : memref<1x8x2xf32, #tpu.memory_space<vmem>>, vector<1x8x2xf32>
    %197 = vector.shape_cast %196 : vector<1x8x2xf32> to vector<8x2xf32>
    %198 = vector.shape_cast %195 : vector<8x2xf32> to vector<1x8x2xf32>
    tpu.vector_store %arg17[%c0_176, %c0_177, %c0_178], %198 {strides = array<i32>} : memref<1x8x2xf32, #tpu.memory_space<vmem>>, vector<1x8x2xf32>,
    return
  }
  func.func @transform_0(%arg0: i32) -> (i32, i32, i32) {
    %c0_i32 = arith.constant 0 : i32
    %c0_i32_0 = arith.constant 0 : i32
    %c0_i32_1 = arith.constant 0 : i32
    return %arg0, %c0_i32, %c0_i32_0 : i32, i32, i32
  }
  func.func @transform_1(%arg0: i32) -> (i32, i32, i32) {
    %c0_i32 = arith.constant 0 : i32
    %c0_i32_0 = arith.constant 0 : i32
    %c0_i32_1 = arith.constant 0 : i32
    %c0_i32_2 = arith.constant 0 : i32
    return %c0_i32, %c0_i32_0, %c0_i32_1 : i32, i32, i32
  }
  func.func @transform_2(%arg0: i32) -> (i32, i32, i32) {
    %c0_i32 = arith.constant 0 : i32
    %c0_i32_0 = arith.constant 0 : i32
    %c0_i32_1 = arith.constant 0 : i32
    %c0_i32_2 = arith.constant 0 : i32
    return %c0_i32, %c0_i32_0, %c0_i32_1 : i32, i32, i32
  }
  func.func @transform_3(%arg0: i32) -> (i32, i32) {
    %c0_i32 = arith.constant 0 : i32
    %c0_i32_0 = arith.constant 0 : i32
    %c0_i32_1 = arith.constant 0 : i32
    return %c0_i32, %c0_i32_0 : i32, i32
  }
  func.func @transform_4(%arg0: i32) -> (i32, i32, i32) {
    %c0_i32 = arith.constant 0 : i32
    %c0_i32_0 = arith.constant 0 : i32
    %c0_i32_1 = arith.constant 0 : i32
    %c0_i32_2 = arith.constant 0 : i32
    return %c0_i32, %c0_i32_0, %c0_i32_1 : i32, i32, i32
  }
  func.func @transform_5(%arg0: i32) -> (i32, i32, i32) {
    %c0_i32 = arith.constant 0 : i32
    %c0_i32_0 = arith.constant 0 : i32
    %c0_i32_1 = arith.constant 0 : i32
    %c0_i32_2 = arith.constant 0 : i32
    return %c0_i32, %c0_i32_0, %c0_i32_1 : i32, i32, i32
  }
  func.func @transform_6(%arg0: i32) -> (i32, i32) {
    %c0_i32 = arith.constant 0 : i32
    %c0_i32_0 = arith.constant 0 : i32
    %c0_i32_1 = arith.constant 0 : i32
    return %c0_i32, %c0_i32_0 : i32, i32
  }
  func.func @transform_7(%arg0: i32) -> (i32, i32, i32) {
    %c0_i32 = arith.constant 0 : i32
    %c0_i32_0 = arith.constant 0 : i32
    %c0_i32_1 = arith.constant 0 : i32
    %c0_i32_2 = arith.constant 0 : i32
    return %c0_i32, %c0_i32_0, %c0_i32_1 : i32, i32, i32
  }
  func.func @transform_8(%arg0: i32) -> (i32, i32, i32) {
    %c0_i32 = arith.constant 0 : i32
    %c0_i32_0 = arith.constant 0 : i32
    %c0_i32_1 = arith.constant 0 : i32
    %c0_i32_2 = arith.constant 0 : i32
    return %c0_i32, %c0_i32_0, %c0_i32_1 : i32, i32, i32
  }
  func.func @transform_9(%arg0: i32) -> (i32, i32) {
    %c0_i32 = arith.constant 0 : i32
    %c0_i32_0 = arith.constant 0 : i32
    %c0_i32_1 = arith.constant 0 : i32
    return %c0_i32, %c0_i32_0 : i32, i32
  }
  func.func @transform_10(%arg0: i32) -> (i32, i32, i32) {
    %c0_i32 = arith.constant 0 : i32
    %c0_i32_0 = arith.constant 0 : i32
    %c0_i32_1 = arith.constant 0 : i32
    %c0_i32_2 = arith.constant 0 : i32
    return %c0_i32, %c0_i32_0, %c0_i32_1 : i32, i32, i32
  }
  func.func @transform_11(%arg0: i32) -> (i32, i32, i32) {
    %c0_i32 = arith.constant 0 : i32
    %c0_i32_0 = arith.constant 0 : i32
    %c0_i32_1 = arith.constant 0 : i32
    %c0_i32_2 = arith.constant 0 : i32
    return %c0_i32, %c0_i32_0, %c0_i32_1 : i32, i32, i32
  }
  func.func @transform_12(%arg0: i32) -> (i32, i32) {
    %c0_i32 = arith.constant 0 : i32
    %c0_i32_0 = arith.constant 0 : i32
    %c0_i32_1 = arith.constant 0 : i32
    return %c0_i32, %c0_i32_0 : i32, i32
  }
  func.func @transform_13(%arg0: i32) -> (i32, i32, i32) {
    %c0_i32 = arith.constant 0 : i32
    %c0_i32_0 = arith.constant 0 : i32
    %c0_i32_1 = arith.constant 0 : i32
    %c0_i32_2 = arith.constant 0 : i32
    return %c0_i32, %c0_i32_0, %c0_i32_1 : i32, i32, i32
  }
  func.func @transform_14(%arg0: i32) -> (i32, i32, i32) {
    %c0_i32 = arith.constant 0 : i32
    %c0_i32_0 = arith.constant 0 : i32
    %c0_i32_1 = arith.constant 0 : i32
    %c0_i32_2 = arith.constant 0 : i32
    return %c0_i32, %c0_i32_0, %c0_i32_1 : i32, i32, i32
  }
  func.func @transform_15(%arg0: i32) -> (i32, i32) {
    %c0_i32 = arith.constant 0 : i32
    %c0_i32_0 = arith.constant 0 : i32
    %c0_i32_1 = arith.constant 0 : i32
    return %c0_i32, %c0_i32_0 : i32, i32
  }
  func.func @transform_16(%arg0: i32) -> (i32, i32, i32) {
    %c0_i32 = arith.constant 0 : i32
    %c0_i32_0 = arith.constant 0 : i32
    %c0_i32_1 = arith.constant 0 : i32
    return %arg0, %c0_i32, %c0_i32_0 : i32, i32, i32
  }
}

</mosaic_0001>

<bundles_post_ra>
// kernel: forward.1
= control target key start
LH: loop header
LB: loop body
LE: loop exit
PB: predicated region body
PF: predicated region fallthrough
CT: control target
= control target key end

     0   :  { %s5163_s21 = smov 0   ;;  %s6237_s0 = inlined_call_operand.vmem [shape: bf16[2,32,256], index: 0, kind: input, shape index: {}]   ;;  %s6238_s1 = inlined_call_operand.vmem [shape: bf16[4,16,32], index: 1, kind: input, shape index: {}]   ;;  %s6239_s2 = inlined_call_operand.vmem [shape: bf16[4,256,128], index: 2, kind: input, shape index: {}]   ;;  %s6240_s3 = inlined_call_operand.vmem [shape: f32[1,128], index: 3, kind: input, shape index: {}]   ;;  %s6241_s4 = inlined_call_operand.vmem [shape: bf16[4,8,16], index: 4, kind: input, shape index: {}]   ;;  %s6242_s5 = inlined_call_operand.vmem [shape: bf16[4,128,128], index: 5, kind: input, shape index: {}]   ;;  %s6243_s6 = inlined_call_operand.vmem [shape: f32[1,128], index: 6, kind: input, shape index: {}]   ;;  %s6244_s7 = inlined_call_operand.vmem [shape: bf16[4,8,8], index: 7, kind: input, shape index: {}]   ;;  %s6245_s8 = inlined_call_operand.vmem [shape: bf16[4,128,128], index: 8, kind: input, shape index: {}]   ;;  %s6246_s9 = inlined_call_operand.vmem [shape: f32[1,128], index: 9, kind: input, shape index: {}]   ;;  %s6247_s10 = inlined_call_operand.vmem [shape: bf16[4,8,8], index: 10, kind: input, shape index: {}]   ;;  %s6248_s11 = inlined_call_operand.vmem [shape: bf16[4,128,192], index: 11, kind: input, shape index: {}]   ;;  %s6249_s12 = inlined_call_operand.vmem [shape: f32[1,192], index: 12, kind: input, shape index: {}]   ;;  %s6250_s13 = inlined_call_operand.vmem [shape: bf16[4,8,8], index: 13, kind: input, shape index: {}]   ;;  %s6251_s14 = inlined_call_operand.vmem [shape: bf16[4,192,2], index: 14, kind: input, shape index: {}]   ;;  %s6252_s15 = inlined_call_operand.vmem [shape: f32[1,2], index: 15, kind: input, shape index: {}]   ;;  %s6253_s16 = inlined_call_operand.vmem [shape: f32[2,8,2], index: 16, kind: output, shape index: {}]  }
   0x1   :  { %6254 = sst [smem:[#allocation2_spill]] %s6237_s0 }
   0x2 LB: > { %s3445_s22 = sadd.s32 4294967295, %s5076_s21   ;;  %p3449_p0 = scmp.ge.s32.totalorder %s5076_s21, 1  ;;  %s5076_s21 = sphi %s5163_s21, %s26_s21  }
   0x3   : > { %p462_p1 = scmp.lt.s32.totalorder %s5076_s21, 3 }
   0x5   : > { %p463_p2 = pnand %p3449_p0, %p462_p1 }
   0x6   : > { %p511_p3 = scmp.lt.s32.totalorder (!%p463_p2), %s3445_s22, 1  ;;  %s6255_s26 = sld [smem:[#allocation2_spill]] (!%p463_p2) }
   0x7   : > { %466 = sbr.rel (%p463_p2) target bundleno = 1932 (0x78c), region = 84 }
   0xc   : > { %s6257_s22 = smov (!%p511_p3, %s3445_s22), 1  ;;  %v4830_v12 = vld [vmem:[%s6239_s2 + $0x78] sm:$0xff]  ;;  %v4814_v14 = vld [vmem:[%s6238_s1] sm:$0xff]  ;;  %v4831_v15 = vld [vmem:[%s6238_s1 + $0x8] sm:$0xff]  ;;  %vm552_vm0 = vcmask 261120   ;;  %vm1354_vm3 = vcmask 130048  }
   0xd   : > { %s4809_s23 = sshll.u32 %s6257_s22, 5  ;;  %v4822_v13 = vld [vmem:[%s6239_s2 + $0x38] sm:$0xff]  ;;  %v4829_v18 = vld [vmem:[%s6239_s2 + $0x70] sm:$0xff]  ;;  %v4828_v22 = vld [vmem:[%s6239_s2 + $0x68] sm:$0xff]  ;;  %vm1756_vm5 = vcmask 1043456   ;;  %vm1752_vm6 = vcmask 64512  }
   0xe   : > { %s515_s27 = scalar_lea.vmem %s6255_s26, %s4809_s23  ;;  %v4839_v16 = vld [vmem:[%s6239_s2 + $0xb8] sm:$0xff]  ;;  %v4821_v19 = vld [vmem:[%s6239_s2 + $0x30] sm:$0xff]  ;;  %v4820_v23 = vld [vmem:[%s6239_s2 + $0x28] sm:$0xff]  ;;  %vm2934_vm10 = vcmask 523264   ;;  %s3452_s19 = sshll.u32 %s6257_s22, 3  ;;  %vm3390_vm11 = vcmask 15360  }
   0xf   : > { %v4812_v0 = vld [vmem:[%s515_s27 + $0x14] sm:$0xf]  ;;  %v3469_v1 = vld [vmem:[%s515_s27 + $0x18] sm:$0xf0]  ;;  %v3467_v2 = vld [vmem:[%s515_s27 + $0x10] sm:$0xf]  ;;  %s519_s26 = scalar_lea.vmem %s6253_s16, %s3452_s19 }
  0x10   : > { %v5177_v3 = vor.u32 %v4812_v0, %v3469_v1  ;;  %v4813_v4 = vld [vmem:[%s515_s27 + $0x14] sm:$0xf0]  ;;  %v4810_v5 = vld [vmem:[%s515_s27 + $0x4] sm:$0xf]  ;;  %v3461_v6 = vld [vmem:[%s515_s27 + $0x8] sm:$0xf0] }
  0x11   : > { %v5179_v7 = vor.u32 %v4813_v4, %v3467_v2  ;;  %v3459_v8 = vld [vmem:[%s515_s27] sm:$0xf]  ;;  %v4811_v9 = vld [vmem:[%s515_s27 + $0x4] sm:$0xf0]  ;;  %v5183_v10 = vor.u32 %v4810_v5, %v3461_v6  ;;  %v4847_v17 = vld [vmem:[%s6239_s2 + $0xf8] sm:$0xff] }
  0x12   : > { %576 = vmatpush.bf16.msra.mxu1 %v5177_v3  ;;  %649 = vmatpush.bf16.msra.mxu3 %v5177_v3  ;;  %v5187_v11 = vor.u32 %v4811_v9, %v3459_v8  ;;  %v4838_v20 = vld [vmem:[%s6239_s2 + $0xb0] sm:$0xff]  ;;  %v4837_v24 = vld [vmem:[%s6239_s2 + $0xa8] sm:$0xff]  ;;  %v4827_v26 = vld [vmem:[%s6239_s2 + $0x60] sm:$0xff] }
  0x13   : > { %635 = vmatpush.bf16.msra.mxu2 %v5179_v7  ;;  %562 = vmatpush.bf16.msra.mxu0 %v5179_v7  ;;  %v4846_v21 = vld [vmem:[%s6239_s2 + $0xf0] sm:$0xff]  ;;  %v4845_v25 = vld [vmem:[%s6239_s2 + $0xe8] sm:$0xff]  ;;  %v4819_v27 = vld [vmem:[%s6239_s2 + $0x20] sm:$0xff] }
  0x14   : > { %v4836_v28 = vld [vmem:[%s6239_s2 + $0xa0] sm:$0xff]  ;;  %v4826_v30 = vld [vmem:[%s6239_s2 + $0x58] sm:$0xff]  ;;  %v4825_v32 = vld [vmem:[%s6239_s2 + $0x50] sm:$0xff] }
  0x15   : > { %v4844_v29 = vld [vmem:[%s6239_s2 + $0xe0] sm:$0xff]  ;;  %v4818_v31 = vld [vmem:[%s6239_s2 + $0x18] sm:$0xff]  ;;  %v4817_v35 = vld [vmem:[%s6239_s2 + $0x10] sm:$0xff] }
  0x16   : > { %577 = vmatpush.bf16.msra.mxu1 %v5183_v10  ;;  %650 = vmatpush.bf16.msra.mxu3 %v5183_v10  ;;  %v4835_v33 = vld [vmem:[%s6239_s2 + $0x98] sm:$0xff]  ;;  %v4824_v36 = vld [vmem:[%s6239_s2 + $0x48] sm:$0xff]  ;;  %v4834_v37 = vld [vmem:[%s6239_s2 + $0x90] sm:$0xff] }
  0x17   : > { %636 = vmatpush.bf16.msra.mxu2 %v5187_v11  ;;  %563 = vmatpush.bf16.msra.mxu0 %v5187_v11  ;;  %v4843_v34 = vld [vmem:[%s6239_s2 + $0xd8] sm:$0xff]  ;;  %v4842_v38 = vld [vmem:[%s6239_s2 + $0xd0] sm:$0xff]  ;;  %v4816_v39 = vld [vmem:[%s6239_s2 + $0x8] sm:$0xff] }
  0x18   : > { %v4823_v40 = vld [vmem:[%s6239_s2 + $0x40] sm:$0xff]  ;;  %v4833_v41 = vld [vmem:[%s6239_s2 + $0x88] sm:$0xff]  ;;  %v4856_v58 = vld [vmem:[%s6239_s2 + $0x138] sm:$0xff] }
  0x19   : > { %3474 = vmatmul.msk.bf16.vlgmr.msra.gmra.mxu1 %vm552_vm0, %v4814_v14  ;;  %3482 = vmatmul.msk.bf16.vlgmr.msra.gmra.mxu3 %vm552_vm0, %v4831_v15  ;;  %v4841_v42 = vld [vmem:[%s6239_s2 + $0xc8] sm:$0xff]  ;;  %v4815_v43 = vld [vmem:[%s6239_s2] sm:$0xff]  ;;  %v4864_v59 = vld [vmem:[%s6239_s2 + $0x178] sm:$0xff] }
  0x1a   : > { %926 = vmatpush.bf16.msrb.mxu3 %v4830_v12  ;;  %3481 = vmatmul.msk.bf16.vlgmr.msra.gmra.mxu2 %vm552_vm0, %v4831_v15  ;;  %v4832_v44 = vld [vmem:[%s6239_s2 + $0x80] sm:$0xff]  ;;  %v4881_v60 = vld [vmem:[%s6239_s2 + $0x1f8] sm:$0xff]  ;;  %v4848_v61 = vld [vmem:[%s6238_s1 + $0x10] sm:$0xff] }
  0x1b   : > { %912 = vmatpush.bf16.msrb.mxu2 %v4822_v13  ;;  %3473 = vmatmul.msk.bf16.vlgmr.msra.gmra.mxu0 %vm552_vm0, %v4814_v14  ;;  %v4840_v45 = vld [vmem:[%s6239_s2 + $0xc0] sm:$0xff]  ;;  %v4865_v62 = vld [vmem:[%s6238_s1 + $0x18] sm:$0xff]  ;;  %v4855_v63 = vld [vmem:[%s6239_s2 + $0x130] sm:$0xff] }
  0x1c   : > { %788 = vmatpush.bf16.msrb.mxu0 %v4839_v16  ;;  %802 = vmatpush.bf16.msrb.mxu1 %v4847_v17  ;;  %v4863_v0 = vld [vmem:[%s6239_s2 + $0x170] sm:$0xff]  ;;  %v4854_v2 = vld [vmem:[%s6239_s2 + $0x128] sm:$0xff]  ;;  %v4853_v5 = vld [vmem:[%s6239_s2 + $0x120] sm:$0xff] }
  0x1d   : > { %v4880_v1 = vld [vmem:[%s6239_s2 + $0x1f0] sm:$0xff]  ;;  %v4879_v4 = vld [vmem:[%s6239_s2 + $0x1e8] sm:$0xff]  ;;  %v4861_v6 = vld [vmem:[%s6239_s2 + $0x160] sm:$0xff] }
  0x1e   : > { %927 = vmatpush.bf16.msrb.mxu3 %v4829_v18  ;;  %v4852_v8 = vld [vmem:[%s6239_s2 + $0x118] sm:$0xff]  ;;  %v4851_v12 = vld [vmem:[%s6239_s2 + $0x110] sm:$0xff]  ;;  %v4850_v16 = vld [vmem:[%s6239_s2 + $0x108] sm:$0xff] }
  0x1f   : > { %913 = vmatpush.bf16.msrb.mxu2 %v4821_v19  ;;  %v4860_v9 = vld [vmem:[%s6239_s2 + $0x158] sm:$0xff]  ;;  %v4859_v13 = vld [vmem:[%s6239_s2 + $0x150] sm:$0xff]  ;;  %v4858_v17 = vld [vmem:[%s6239_s2 + $0x148] sm:$0xff] }
  0x20   : > { %789 = vmatpush.bf16.msrb.mxu0 %v4838_v20  ;;  %803 = vmatpush.bf16.msrb.mxu1 %v4846_v21  ;;  %v4872_v14 = vld [vmem:[%s6239_s2 + $0x1b0] sm:$0xff]  ;;  %v4871_v18 = vld [vmem:[%s6239_s2 + $0x1a8] sm:$0xff]  ;;  %v4849_v20 = vld [vmem:[%s6239_s2 + $0x100] sm:$0xff] }
  0x21   : > { %v4876_v15 = vld [vmem:[%s6239_s2 + $0x1d0] sm:$0xff]  ;;  %v4875_v19 = vld [vmem:[%s6239_s2 + $0x1c8] sm:$0xff]  ;;  %v4857_v21 = vld [vmem:[%s6239_s2 + $0x140] sm:$0xff] }
  0x22   : > { %928 = vmatpush.bf16.msrb.mxu3 %v4828_v22  ;;  %v4870_v22 = vld [vmem:[%s6239_s2 + $0x1a0] sm:$0xff] }
  0x23   : > { %914 = vmatpush.bf16.msrb.mxu2 %v4820_v23  ;;  %v4874_v23 = vld [vmem:[%s6239_s2 + $0x1c0] sm:$0xff] }
  0x24   : > { %790 = vmatpush.bf16.msrb.mxu0 %v4837_v24  ;;  %804 = vmatpush.bf16.msrb.mxu1 %v4845_v25  ;;  %v4869_v24 = vld [vmem:[%s6239_s2 + $0x198] sm:$0xff]  ;;  %v4868_v25 = vld [vmem:[%s6239_s2 + $0x190] sm:$0xff] }
  0x26   : > { %929 = vmatpush.bf16.msrb.mxu3 %v4827_v26 }
  0x27   : > { %915 = vmatpush.bf16.msrb.mxu2 %v4819_v27 }
  0x28   : > { %791 = vmatpush.bf16.msrb.mxu0 %v4836_v28  ;;  %805 = vmatpush.bf16.msrb.mxu1 %v4844_v29 }
  0x2a   : > { %930 = vmatpush.bf16.msrb.mxu3 %v4826_v30 }
  0x2b   : > { %916 = vmatpush.bf16.msrb.mxu2 %v4818_v31  ;;  %v4867_v31 = vld [vmem:[%s6239_s2 + $0x188] sm:$0xff] }
  0x2c   : > { %792 = vmatpush.bf16.msrb.mxu0 %v4835_v33  ;;  %806 = vmatpush.bf16.msrb.mxu1 %v4843_v34  ;;  %v4866_v34 = vld [vmem:[%s6239_s2 + $0x180] sm:$0xff] }
  0x2e   : > { %931 = vmatpush.bf16.msrb.mxu3 %v4825_v32 }
  0x2f   : > { %917 = vmatpush.bf16.msrb.mxu2 %v4817_v35 }
  0x30   : > { %793 = vmatpush.bf16.msrb.mxu0 %v4834_v37  ;;  %807 = vmatpush.bf16.msrb.mxu1 %v4842_v38 }
  0x32   : > { %932 = vmatpush.bf16.msrb.mxu3 %v4824_v36 }
  0x33   : > { %918 = vmatpush.bf16.msrb.mxu2 %v4816_v39 }
  0x34   : > { %794 = vmatpush.bf16.msrb.mxu0 %v4833_v41  ;;  %808 = vmatpush.bf16.msrb.mxu1 %v4841_v42 }
  0x36   : > { %933 = vmatpush.bf16.msrb.mxu3 %v4823_v40 }
  0x37   : > { %919 = vmatpush.bf16.msrb.mxu2 %v4815_v43 }
  0x38   : > { %795 = vmatpush.bf16.msrb.mxu0 %v4832_v44  ;;  %809 = vmatpush.bf16.msrb.mxu1 %v4840_v45 }
  0x3a   : > { %971 = vmatpush.bf16.msra.mxu3 %v5177_v3 }
  0x3b   : > { %1110 = vmatpush.bf16.msra.mxu2 %v4856_v58 }
  0x3c   : > { %957 = vmatpush.bf16.msra.mxu0 %v5179_v7  ;;  %1171 = vmatpush.bf16.msra.mxu1 %v5177_v3  ;;  %v4862_v3 = vld [vmem:[%s6239_s2 + $0x168] sm:$0xff] }
  0x3e   : > { %972 = vmatpush.bf16.msra.mxu3 %v5183_v10 }
  0x3f   : > { %1111 = vmatpush.bf16.msra.mxu2 %v4855_v63 }
  0x40   : > { %958 = vmatpush.bf16.msra.mxu0 %v5187_v11  ;;  %1172 = vmatpush.bf16.msra.mxu1 %v5183_v10  ;;  %v4873_v10 = vld [vmem:[%s6239_s2 + $0x1b8] sm:$0xff] }
  0x43   : > { %1112 = vmatpush.bf16.msra.mxu2 %v4854_v2 }
  0x47   : > { %1113 = vmatpush.bf16.msra.mxu2 %v4853_v5 }
  0x4b   : > { %1114 = vmatpush.bf16.msra.mxu2 %v4852_v8  ;;  %v4904_v8 = vld [vmem:[%s6242_s5 + $0xb0] sm:$0xff] }
  0x4f   : > { %1115 = vmatpush.bf16.msra.mxu2 %v4851_v12  ;;  %v4903_v12 = vld [vmem:[%s6242_s5 + $0xa8] sm:$0xff] }
  0x53   : > { %1116 = vmatpush.bf16.msra.mxu2 %v4850_v16  ;;  %v4897_v16 = vld [vmem:[%s6242_s5 + $0x78] sm:$0xff] }
  0x57   : > { %1117 = vmatpush.bf16.msra.mxu2 %v4849_v20  ;;  %v3852_v20 = vld [vmem:[%s6241_s4 + $0x4] sm:$0xf] }
  0x96   : > { %v579_v46 = vpop.f32.mrf.mxu1 }
  0x98   : > { %v565_v47 = vpop.f32.mrf.mxu0 }
  0x9c   : > { %v652_v48 = vpop.f32.mrf.mxu3 }
  0x9d   : > { %v638_v49 = vpop.f32.mrf.mxu2 }
  0x9e   : > { %v581_v50 = vpop.f32.mrf.mxu1 }
  0x9f   : > { %v585_v51 = vpack.c.bf16 %v581_v50, %v579_v46 }
  0xa0   : > { %v567_v52 = vpop.f32.mrf.mxu0 }
  0xa1   : > { %v584_v53 = vpack.c.bf16 %v567_v52, %v565_v47  ;;  %934 = vmatmul.bf16.vlgmr.msrb.gmra.mxu3 %v585_v51 }
  0xa2   : > { %1124 = vmatpush.bf16.msrb.mxu3 %v4864_v59 }
  0xa3   : > { %920 = vmatmul.bf16.vlgmr.msrb.gmra.mxu2 %v584_v53 }
  0xa4   : > { %v654_v54 = vpop.f32.mrf.mxu3 }
  0xa5   : > { %v640_v55 = vpop.f32.mrf.mxu2  ;;  %v658_v56 = vpack.c.bf16 %v654_v54, %v652_v48 }
  0xa6   : > { %v657_v57 = vpack.c.bf16 %v640_v55, %v638_v49  ;;  %1125 = vmatpush.bf16.msrb.mxu3 %v4863_v0  ;;  %v5066_v0 = vld [vmem:[%s6240_s3] ss:$0 sm:$0xff] }
  0xa7   : > { %810 = vmatmul.bf16.vlgmr.msrb.gmra.mxu1 %v658_v56 }
  0xa8   : > { %796 = vmatmul.bf16.vlgmr.msrb.gmra.mxu0 %v657_v57  ;;  %1324 = vmatpush.bf16.msrb.mxu1 %v4881_v60 }
  0xa9   : > { %1157 = vmatpush.bf16.msrb.mxu0 %v5179_v7  ;;  %v4878_v7 = vld [vmem:[%s6239_s2 + $0x1e0] sm:$0xff] }
  0xaa   : > { %1126 = vmatpush.bf16.msrb.mxu3 %v4862_v3 }
  0xac   : > { %1325 = vmatpush.bf16.msrb.mxu1 %v4880_v1 }
  0xad   : > { %1158 = vmatpush.bf16.msrb.mxu0 %v5187_v11  ;;  %v4877_v11 = vld [vmem:[%s6239_s2 + $0x1d8] sm:$0xff] }
  0xae   : > { %1127 = vmatpush.bf16.msrb.mxu3 %v4861_v6 }
  0xb0   : > { %1326 = vmatpush.bf16.msrb.mxu1 %v4879_v4  ;;  %v4905_v4 = vld [vmem:[%s6242_s5 + $0xb8] sm:$0xff] }
  0xb1   : > { %3650 = vmatmul.msk.bf16.vlgmr.msra.gmra.mxu3 %vm552_vm0, %v4848_v61 }
  0xb2   : > { %1128 = vmatpush.bf16.msrb.mxu3 %v4860_v9 }
  0xb4   : > { %1327 = vmatpush.bf16.msrb.mxu1 %v4878_v7 }
  0xb6   : > { %1129 = vmatpush.bf16.msrb.mxu3 %v4859_v13 }
  0xb7   : > { %3754 = vmatmul.msk.bf16.vlgmr.msra.gmra.mxu1 %vm552_vm0, %v4865_v62 }
  0xb8   : > { %3649 = vmatmul.msk.bf16.vlgmr.msra.gmra.mxu0 %vm552_vm0, %v4848_v61  ;;  %1328 = vmatpush.bf16.msrb.mxu1 %v4877_v11 }
  0xb9   : > { %1310 = vmatpush.bf16.msra.mxu0 %v4873_v10 }
  0xba   : > { %1130 = vmatpush.bf16.msrb.mxu3 %v4858_v17 }
  0xbc   : > { %1329 = vmatpush.bf16.msrb.mxu1 %v4876_v15 }
  0xbd   : > { %1311 = vmatpush.bf16.msra.mxu0 %v4872_v14 }
  0xbe   : > { %1131 = vmatpush.bf16.msrb.mxu3 %v4857_v21  ;;  %v4902_v21 = vld [vmem:[%s6242_s5 + $0xa0] sm:$0xff] }
  0xc0   : > { %1330 = vmatpush.bf16.msrb.mxu1 %v4875_v19  ;;  %v1353_v19 = vld [vmem:[%s6241_s4] sm:$0xf] }
  0xc1   : > { %1312 = vmatpush.bf16.msra.mxu0 %v4871_v18  ;;  %v4889_v18 = vld [vmem:[%s6242_s5 + $0x38] sm:$0xff] }
  0xc4   : > { %1331 = vmatpush.bf16.msrb.mxu1 %v4874_v23  ;;  %v4896_v23 = vld [vmem:[%s6242_s5 + $0x70] sm:$0xff] }
  0xc5   : > { %1313 = vmatpush.bf16.msra.mxu0 %v4870_v22  ;;  %v3934_v22 = vld [vmem:[%s6241_s4 + $0x8] sm:$0xf] }
  0xc8   : > { %3753 = vmatmul.msk.bf16.vlgmr.msrb.gmra.mxu0 %vm552_vm0, %v4865_v62  ;;  %1630 = vmatpush.bf16.msra.mxu1 %v4905_v4 }
  0xc9   : > { %1314 = vmatpush.bf16.msra.mxu0 %v4869_v24  ;;  %v4888_v24 = vld [vmem:[%s6242_s5 + $0x30] sm:$0xff] }
  0xcc   : > { %1631 = vmatpush.bf16.msra.mxu1 %v4904_v8 }
  0xcd   : > { %1315 = vmatpush.bf16.msra.mxu0 %v4868_v25  ;;  %v4901_v25 = vld [vmem:[%s6242_s5 + $0x98] sm:$0xff] }
  0xd0   : > { %1632 = vmatpush.bf16.msra.mxu1 %v4903_v12 }
  0xd1   : > { %1316 = vmatpush.bf16.msra.mxu0 %v4867_v31  ;;  %v4899_v31 = vld [vmem:[%s6242_s5 + $0x88] sm:$0xff] }
  0xd4   : > { %1633 = vmatpush.bf16.msra.mxu1 %v4902_v21  ;;  %v4937_v21 = vld [vmem:[%s6245_s8 + $0xb8] sm:$0xff] }
  0xd5   : > { %1317 = vmatpush.bf16.msra.mxu0 %v4866_v34  ;;  %v3984_v34 = vld [vmem:[%s6241_s4 + $0xc] sm:$0xf] }
  0xd8   : > { %1634 = vmatpush.bf16.msra.mxu1 %v4901_v25  ;;  %v4935_v25 = vld [vmem:[%s6245_s8 + $0xa8] sm:$0xff] }
 0x124   : > { %v811_v26 = vpop.f32.mrf.mxu1  ;;  %v935_v27 = vpop.f32.mrf.mxu3 }
 0x125   : > { %v797_v28 = vpop.f32.mrf.mxu0 }
 0x126   : > { %v921_v29 = vpop.f32.mrf.mxu2  ;;  %v812_v30 = vadd.f32 %v811_v26, %v797_v28  ;;  %v4895_v26 = vld [vmem:[%s6242_s5 + $0x68] sm:$0xff]  ;;  %v4900_v28 = vld [vmem:[%s6242_s5 + $0x90] sm:$0xff] }
 0x127   : > { %1635 = vmatpush.bf16.msra.mxu1 %v4900_v28  ;;  %v4117_v28 = vld [vmem:[%s6244_s7 + $0x8] sm:$0xf] }
 0x128   : > { %v922_v32 = vadd.f32 %v921_v29, %v812_v30  ;;  %v4894_v29 = vld [vmem:[%s6242_s5 + $0x60] sm:$0xff] }
 0x129   : > { %v4886_v30 = vld [vmem:[%s6242_s5 + $0x20] sm:$0xff] }
 0x12a   : > { %v936_v33 = vadd.f32 %v935_v27, %v922_v32  ;;  %v4887_v27 = vld [vmem:[%s6242_s5 + $0x28] sm:$0xff]  ;;  %v4893_v32 = vld [vmem:[%s6242_s5 + $0x58] sm:$0xff] }
 0x12b   : > { %1636 = vmatpush.bf16.msra.mxu1 %v4899_v31  ;;  %v4924_v31 = vld [vmem:[%s6245_s8 + $0x50] sm:$0xff] }
 0x12c   : > { %v813_v35 = vpop.f32.mrf.mxu1  ;;  %v937_v36 = vpop.f32.mrf.mxu3 }
 0x12d   : > { %v799_v37 = vpop.f32.mrf.mxu0 }
 0x12e   : > { %v923_v50 = vpop.f32.mrf.mxu2  ;;  %v814_v54 = vadd.f32 %v813_v35, %v799_v37  ;;  %v4892_v35 = vld [vmem:[%s6242_s5 + $0x50] sm:$0xff]  ;;  %v4891_v37 = vld [vmem:[%s6242_s5 + $0x48] sm:$0xff] }
 0x130   : > { %v924_v60 = vadd.f32 %v923_v50, %v814_v54 }
 0x132   : > { %v938_v1 = vadd.f32 %v937_v36, %v924_v60  ;;  %v4884_v36 = vld [vmem:[%s6242_s5 + $0x10] sm:$0xff] }
 0x134   : > { %v974_v38 = vpop.f32.mrf.mxu3  ;;  %v1174_v39 = vpop.f32.mrf.mxu1 }
 0x135   : > { %v960_v40 = vpop.f32.mrf.mxu0 }
 0x13c   : > { %v976_v41 = vpop.f32.mrf.mxu3  ;;  %v1176_v42 = vpop.f32.mrf.mxu1 }
 0x13d   : > { %v962_v43 = vpop.f32.mrf.mxu0  ;;  %v980_v44 = vpack.c.bf16 %v976_v41, %v974_v38  ;;  %v1180_v45 = vpack.c.bf16 %v1176_v42, %v1174_v39  ;;  %v4890_v38 = vld [vmem:[%s6242_s5 + $0x40] sm:$0xff]  ;;  %v4913_v39 = vld [vmem:[%s6242_s5 + $0xf8] sm:$0xff]  ;;  %v4883_v42 = vld [vmem:[%s6242_s5 + $0x8] sm:$0xff] }
 0x13e   : > { %v979_v46 = vpack.c.bf16 %v962_v43, %v960_v40  ;;  %v4912_v40 = vld [vmem:[%s6242_s5 + $0xf0] sm:$0xff]  ;;  %v4898_v41 = vld [vmem:[%s6242_s5 + $0x80] sm:$0xff]  ;;  %v4911_v43 = vld [vmem:[%s6242_s5 + $0xe8] sm:$0xff] }
 0x13f   : > { %1132 = vmatmul.bf16.vlgmr.msrb.gmra.mxu3 %v980_v44  ;;  %1332 = vmatmul.bf16.vlgmr.msrb.gmra.mxu1 %v1180_v45  ;;  %v4882_v44 = vld [vmem:[%s6242_s5] sm:$0xff] }
 0x140   : > { %1118 = vmatmul.bf16.vlgmr.msra.gmra.mxu2 %v979_v46  ;;  %1637 = vmatpush.bf16.msra.mxu1 %v4898_v41  ;;  %v4910_v45 = vld [vmem:[%s6242_s5 + $0xe0] sm:$0xff]  ;;  %v4909_v46 = vld [vmem:[%s6242_s5 + $0xd8] sm:$0xff]  ;;  %v4932_v41 = vld [vmem:[%s6245_s8 + $0x90] sm:$0xff] }
 0x145   : > { %v1160_v47 = vpop.f32.mrf.mxu0 }
 0x14d   : > { %v1162_v48 = vpop.f32.mrf.mxu0 }
 0x14e   : > { %v1179_v49 = vpack.c.bf16 %v1162_v48, %v1160_v47  ;;  %v4908_v47 = vld [vmem:[%s6242_s5 + $0xd0] sm:$0xff]  ;;  %v4907_v48 = vld [vmem:[%s6242_s5 + $0xc8] sm:$0xff] }
 0x150   : > { %1318 = vmatmul.bf16.vlgmr.msra.gmra.mxu0 %v1179_v49  ;;  %v4906_v49 = vld [vmem:[%s6242_s5 + $0xc0] sm:$0xff] }
 0x1bc   : > { %v1333_v53 = vpop.f32.mrf.mxu1 }
 0x1c2   : > { %v1133_v52 = vpop.f32.mrf.mxu3 }
 0x1c3   : > { %v1119_v51 = vpop.f32.mrf.mxu2 }
 0x1c4   : > { %v1134_v55 = vadd.f32 %v1133_v52, %v1119_v51  ;;  %v1335_v2 = vpop.f32.mrf.mxu1 }
 0x1c6   : > { %v1138_v61 = vadd.f32 %v1134_v55, %v936_v33  ;;  %v4885_v33 = vld [vmem:[%s6242_s5 + $0x18] sm:$0xff] }
 0x1ca   : > { %v1135_v59 = vpop.f32.mrf.mxu3 }
 0x1cb   : > { %v1121_v58 = vpop.f32.mrf.mxu2 }
 0x1cc   : > { %v1136_v62 = vadd.f32 %v1135_v59, %v1121_v58 }
 0x1cd   : > { %v1319_v56 = vpop.f32.mrf.mxu0 }
 0x1ce   : > { %v1334_v57 = vadd.f32 %v1333_v53, %v1319_v56  ;;  %v1139_v5 = vadd.f32 %v1136_v62, %v938_v1 }
 0x1d0   : > { %v1338_v63 = vadd.f32 %v1334_v57, %v1138_v61 }
 0x1d2   : > { %v1344_v6 = vadd.f32 %v5066_v0, %v1338_v63 }
 0x1d4   : > { %v1348_v10 = vmul.f32 0.2, %v1344_v6  ;;  %vm1346_vm1 = vcmp.ge.f32.partialorder %v1344_v6, 0.0 }
 0x1d5   : > { %v1321_v3 = vpop.f32.mrf.mxu0 }
 0x1d6   : > { %v1336_v7 = vadd.f32 %v1335_v2, %v1321_v3  ;;  %v1350_v14 = vsel %vm1346_vm1, %v1344_v6, %v1348_v10  ;;  %v5067_v6 = vld [vmem:[%s6243_s6] ss:$0 sm:$0xff] }
 0x1d8   : > { %v1339_v9 = vadd.f32 %v1336_v7, %v1139_v5 }
 0x1da   : > { %v1345_v11 = vadd.f32 %v5066_v0, %v1339_v9 }
 0x1dc   : > { %vm1347_vm2 = vcmp.ge.f32.partialorder %v1345_v11, 0.0  ;;  %v1349_v13 = vmul.f32 0.2, %v1345_v11 }
 0x1de   : > { %v1351_v15 = vsel %vm1347_vm2, %v1345_v11, %v1349_v13 }
 0x1df   : > { %v1352_v17 = vpack.c.bf16 %v1351_v15, %v1350_v14  ;;  %v1751_v15 = vld [vmem:[%s6244_s7] sm:$0xf] }
 0x1e1   : > { %1365 = vmatpush.bf16.msrb.mxu2 %v1352_v17  ;;  %1400 = vmatpush.bf16.msra.mxu3 %v1352_v17 }
 0x1e2   : > { %1558 = vmatpush.bf16.msrb.mxu0 %v1352_v17 }
 0x1e4   : > { %3851 = vmatmul.msk.bf16.vlgmr.msrb.gmra.mxu2 %vm1354_vm3, %v1353_v19  ;;  %3853 = vmatmul.msk.bf16.vlgmr.msra.gmra.mxu3 %vm1354_vm3, %v3852_v20  ;;  %v4928_v19 = vld [vmem:[%s6245_s8 + $0x70] sm:$0xff] }
 0x1e5   : > { %1472 = vmatpush.bf16.msra.mxu2 %v4897_v16  ;;  %1533 = vmatpush.bf16.msrb.mxu3 %v4889_v18  ;;  %v4035_v16 = vld [vmem:[%s6244_s7 + $0x4] sm:$0xf]  ;;  %v4921_v18 = vld [vmem:[%s6245_s8 + $0x38] sm:$0xff]  ;;  %v4920_v20 = vld [vmem:[%s6245_s8 + $0x30] sm:$0xff] }
 0x1e6   : > { %1656 = vmatpush.bf16.msra.mxu0 %v1352_v17  ;;  %v4929_v17 = vld [vmem:[%s6245_s8 + $0x78] sm:$0xff] }
 0x1e7   : > { %3935 = vmatmul.msk.bf16.vlgmr.msrb.gmra.mxu0 %vm1354_vm3, %v3934_v22  ;;  %1874 = vmatpush.bf16.msrb.mxu1 %v4929_v17  ;;  %v4936_v22 = vld [vmem:[%s6245_s8 + $0xb0] sm:$0xff]  ;;  %v4270_v17 = vld [vmem:[%s6248_s11 + $0xc0] sm:$0xf] }
 0x1e9   : > { %1473 = vmatpush.bf16.msra.mxu2 %v4896_v23  ;;  %1534 = vmatpush.bf16.msrb.mxu3 %v4888_v24  ;;  %v4927_v23 = vld [vmem:[%s6245_s8 + $0x68] sm:$0xff] }
 0x1ea   : > { %v4919_v24 = vld [vmem:[%s6245_s8 + $0x28] sm:$0xff] }
 0x1eb   : > { %1875 = vmatpush.bf16.msrb.mxu1 %v4928_v19  ;;  %v4954_v19 = vld [vmem:[%s6248_s11 + $0x44] sm:$0xf] }
 0x1ed   : > { %1474 = vmatpush.bf16.msra.mxu2 %v4895_v26  ;;  %1535 = vmatpush.bf16.msrb.mxu3 %v4887_v27  ;;  %v4926_v26 = vld [vmem:[%s6245_s8 + $0x60] sm:$0xff] }
 0x1ee   : > { %v4918_v27 = vld [vmem:[%s6245_s8 + $0x20] sm:$0xff] }
 0x1ef   : > { %1876 = vmatpush.bf16.msrb.mxu1 %v4927_v23  ;;  %v4262_v23 = vld [vmem:[%s6248_s11 + $0xb0] sm:$0xf] }
 0x1f1   : > { %1475 = vmatpush.bf16.msra.mxu2 %v4894_v29  ;;  %1536 = vmatpush.bf16.msrb.mxu3 %v4886_v30  ;;  %v4925_v29 = vld [vmem:[%s6245_s8 + $0x58] sm:$0xff] }
 0x1f2   : > { %v4917_v30 = vld [vmem:[%s6245_s8 + $0x18] sm:$0xff] }
 0x1f3   : > { %1877 = vmatpush.bf16.msrb.mxu1 %v4926_v26 }
 0x1f5   : > { %1476 = vmatpush.bf16.msra.mxu2 %v4893_v32  ;;  %1537 = vmatpush.bf16.msrb.mxu3 %v4885_v33  ;;  %v4916_v32 = vld [vmem:[%s6245_s8 + $0x10] sm:$0xff]  ;;  %v4923_v33 = vld [vmem:[%s6245_s8 + $0x48] sm:$0xff] }
 0x1f7   : > { %3985 = vmatmul.msk.bf16.vlgmr.msra.gmra.mxu0 %vm1354_vm3, %v3984_v34  ;;  %1878 = vmatpush.bf16.msrb.mxu1 %v4925_v29  ;;  %v4167_v34 = vld [vmem:[%s6244_s7 + $0xc] sm:$0xf] }
 0x1f9   : > { %1477 = vmatpush.bf16.msra.mxu2 %v4892_v35  ;;  %1538 = vmatpush.bf16.msrb.mxu3 %v4884_v36  ;;  %v4922_v35 = vld [vmem:[%s6245_s8 + $0x40] sm:$0xff] }
 0x1fa   : > { %v4934_v36 = vld [vmem:[%s6245_s8 + $0xa0] sm:$0xff] }
 0x1fb   : > { %1879 = vmatpush.bf16.msrb.mxu1 %v4924_v31  ;;  %v4967_v31 = vld [vmem:[%s6248_s11 + $0xa4] sm:$0xf0] }
 0x1fd   : > { %1478 = vmatpush.bf16.msra.mxu2 %v4891_v37  ;;  %1539 = vmatpush.bf16.msrb.mxu3 %v4883_v42  ;;  %v4915_v37 = vld [vmem:[%s6245_s8 + $0x8] sm:$0xff]  ;;  %v4944_v42 = vld [vmem:[%s6245_s8 + $0xf0] sm:$0xff] }
 0x1ff   : > { %1880 = vmatpush.bf16.msrb.mxu1 %v4923_v33 }
 0x201   : > { %1479 = vmatpush.bf16.msra.mxu2 %v4890_v38  ;;  %1540 = vmatpush.bf16.msrb.mxu3 %v4882_v44  ;;  %v4933_v38 = vld [vmem:[%s6245_s8 + $0x98] sm:$0xff]  ;;  %v4943_v44 = vld [vmem:[%s6245_s8 + $0xe8] sm:$0xff] }
 0x203   : > { %1881 = vmatpush.bf16.msrb.mxu1 %v4922_v35 }
 0x205   : > { %1728 = vmatpush.bf16.msrb.mxu2 %v4913_v39  ;;  %v4945_v39 = vld [vmem:[%s6245_s8 + $0xf8] sm:$0xff] }
 0x209   : > { %1729 = vmatpush.bf16.msrb.mxu2 %v4912_v40  ;;  %v4914_v40 = vld [vmem:[%s6245_s8] sm:$0xff] }
 0x20d   : > { %1730 = vmatpush.bf16.msrb.mxu2 %v4911_v43  ;;  %v4931_v43 = vld [vmem:[%s6245_s8 + $0x88] sm:$0xff] }
 0x211   : > { %1731 = vmatpush.bf16.msrb.mxu2 %v4910_v45  ;;  %v4930_v45 = vld [vmem:[%s6245_s8 + $0x80] sm:$0xff] }
 0x215   : > { %1732 = vmatpush.bf16.msrb.mxu2 %v4909_v46  ;;  %v4942_v46 = vld [vmem:[%s6245_s8 + $0xe0] sm:$0xff] }
 0x219   : > { %1733 = vmatpush.bf16.msrb.mxu2 %v4908_v47  ;;  %v4941_v47 = vld [vmem:[%s6245_s8 + $0xd8] sm:$0xff] }
 0x21d   : > { %1734 = vmatpush.bf16.msrb.mxu2 %v4907_v48  ;;  %v4940_v48 = vld [vmem:[%s6245_s8 + $0xd0] sm:$0xff] }
 0x221   : > { %1735 = vmatpush.bf16.msrb.mxu2 %v4906_v49  ;;  %v4939_v49 = vld [vmem:[%s6245_s8 + $0xc8] sm:$0xff] }
 0x264   : > { %v1560_v50 = vpop.f32.mrf.mxu0 }
 0x265   : > { %v1564_v51 = vpack.c.bf16 %v1560_v50, %v1560_v50  ;;  %v4938_v50 = vld [vmem:[%s6245_s8 + $0xc0] sm:$0xff] }
 0x267   : > { %1638 = vmatmul.bf16.vlgmr.msra.gmra.mxu1 %v1564_v51  ;;  %v1367_v52 = vpop.f32.mrf.mxu2  ;;  %v1402_v53 = vpop.f32.mrf.mxu3 }
 0x268   : > { %v1371_v54 = vpack.c.bf16 %v1367_v52, %v1367_v52  ;;  %v1406_v55 = vpack.c.bf16 %v1402_v53, %v1402_v53  ;;  %2130 = vmatpush.bf16.msra.mxu1 %v4945_v39 }
 0x26a   : > { %1480 = vmatmul.bf16.vlgmr.msra.gmra.mxu2 %v1406_v55  ;;  %1541 = vmatmul.bf16.vlgmr.msrb.gmra.mxu3 %v1371_v54 }
 0x26b   : > { %2032 = vmatpush.bf16.msra.mxu2 %v4937_v21  ;;  %v4336_v21 = vld [vmem:[%s6248_s11 + $0x48] sm:$0xf0] }
 0x26c   : > { %v1562_v56 = vpop.f32.mrf.mxu0  ;;  %2131 = vmatpush.bf16.msra.mxu1 %v4944_v42 }
 0x26f   : > { %v1404_v57 = vpop.f32.mrf.mxu3  ;;  %v1369_v58 = vpop.f32.mrf.mxu2  ;;  %2033 = vmatpush.bf16.msra.mxu2 %v4936_v22  ;;  %v4339_v22 = vor.u32 %v4954_v19, %v4336_v21  ;;  %v4970_v19 = vld [vmem:[%s6248_s11 + $0xc4] sm:$0xf]  ;;  %v4272_v21 = vld [vmem:[%s6248_s11 + $0xc8] sm:$0xf0] }
 0x270   : > { %2132 = vmatpush.bf16.msra.mxu1 %v4943_v44  ;;  %v4963_v44 = vld [vmem:[%s6248_s11 + $0x84] sm:$0xf0] }
 0x273   : > { %2034 = vmatpush.bf16.msra.mxu2 %v4935_v25  ;;  %v4952_v25 = vld [vmem:[%s6248_s11 + $0x34] sm:$0xf] }
 0x274   : > { %v1658_v59 = vpop.f32.mrf.mxu0  ;;  %2133 = vmatpush.bf16.msra.mxu1 %v4942_v46 }
 0x275   : > { %v1662_v60 = vpack.c.bf16 %v1658_v59, %v1658_v59 }
 0x277   : > { %2035 = vmatpush.bf16.msra.mxu2 %v4934_v36  ;;  %v4246_v36 = vld [vmem:[%s6248_s11 + $0x90] sm:$0xf] }
 0x278   : > { %2134 = vmatpush.bf16.msra.mxu1 %v4941_v47  ;;  %v4304_v47 = vld [vmem:[%s6248_s11 + $0x8] sm:$0xf0] }
 0x27a   : > { %1736 = vmatmul.bf16.vlgmr.msrb.gmra.mxu2 %v1662_v60 }
 0x27b   : > { %2036 = vmatpush.bf16.msra.mxu2 %v4933_v38  ;;  %v4948_v38 = vld [vmem:[%s6248_s11 + $0x14] sm:$0xf] }
 0x27c   : > { %v1660_v61 = vpop.f32.mrf.mxu0  ;;  %2135 = vmatpush.bf16.msra.mxu1 %v4940_v48 }
 0x27f   : > { %2037 = vmatpush.bf16.msra.mxu2 %v4932_v41 }
 0x280   : > { %2136 = vmatpush.bf16.msra.mxu1 %v4939_v49 }
 0x283   : > { %2038 = vmatpush.bf16.msra.mxu2 %v4931_v43  ;;  %v4238_v43 = vld [vmem:[%s6248_s11 + $0x80] sm:$0xf] }
 0x284   : > { %2137 = vmatpush.bf16.msra.mxu1 %v4938_v50  ;;  %v4239_v46 = vor.u32 %v4963_v44, %v4238_v43  ;;  %v4310_v44 = vld [vmem:[%s6248_s11 + $0x10] sm:$0xf] }
 0x287   : > { %2039 = vmatpush.bf16.msra.mxu2 %v4930_v45  ;;  %v4946_v45 = vld [vmem:[%s6248_s11 + $0x4] sm:$0xf] }
 0x288   : > { %v4307_v48 = vor.u32 %v4946_v45, %v4304_v47  ;;  %v4949_v45 = vld [vmem:[%s6248_s11 + $0x14] sm:$0xf0]  ;;  %v4302_v47 = vld [vmem:[%s6248_s11] sm:$0xf] }
 0x2e4   : > { %v1639_v62 = vpop.f32.mrf.mxu1 }
 0x2ec   : > { %v1641_v63 = vpop.f32.mrf.mxu1 }
 0x2ed   : > { %v1481_v0 = vpop.f32.mrf.mxu2  ;;  %v1542_v1 = vpop.f32.mrf.mxu3  ;;  %v4294_v63 = vld [vmem:[%s6248_s11 + $0xf0] sm:$0xf] }
 0x2ee   : > { %v1543_v4 = vadd.f32 %v1542_v1, %v1481_v0  ;;  %v4977_v0 = vld [vmem:[%s6248_s11 + $0xf4] sm:$0xf0]  ;;  %v4960_v1 = vld [vmem:[%s6248_s11 + $0x74] sm:$0xf] }
 0x2f0   : > { %v1643_v5 = vadd.f32 %v1639_v62, %v1543_v4  ;;  %v4286_v4 = vld [vmem:[%s6248_s11 + $0xe0] sm:$0xf] }
 0x2f5   : > { %v1483_v2 = vpop.f32.mrf.mxu2  ;;  %v1544_v3 = vpop.f32.mrf.mxu3 }
 0x2f6   : > { %v4295_v2 = vor.u32 %v4977_v0, %v4294_v63  ;;  %v4360_v3 = vld [vmem:[%s6248_s11 + $0x78] sm:$0xf0]  ;;  %v4961_v63 = vld [vmem:[%s6248_s11 + $0x74] sm:$0xf0] }
 0x2f8   : > { %2306 = vmatpush.bf16.msrb.mxu2 %v4295_v2 }
 0x2fd   : > { %v1737_v7 = vpop.f32.mrf.mxu2 }
 0x2fe   : > { %v1741_v8 = vadd.f32 %v1737_v7, %v1643_v5  ;;  %v4975_v5 = vld [vmem:[%s6248_s11 + $0xe4] sm:$0xf0]  ;;  %v4958_v7 = vld [vmem:[%s6248_s11 + $0x64] sm:$0xf] }
 0x300   : > { %v1746_v9 = vadd.f32 %v5067_v6, %v1741_v8  ;;  %v4363_v6 = vor.u32 %v4960_v1, %v4360_v3  ;;  %v4352_v8 = vld [vmem:[%s6248_s11 + $0x68] sm:$0xf0] }
 0x302   : > { %vm1747_vm4 = vcmp.ge.f32.partialorder %v1746_v9, 0.0  ;;  %v1748_v10 = vmul.f32 0.2, %v1746_v9 }
 0x304   : > { %v1749_v11 = vsel %vm1747_vm4, %v1746_v9, %v1748_v10  ;;  %v4287_v9 = vor.u32 %v4975_v5, %v4286_v4  ;;  %v4355_v10 = vor.u32 %v4958_v7, %v4352_v8  ;;  %v4974_v4 = vld [vmem:[%s6248_s11 + $0xe4] sm:$0xf]  ;;  %v4288_v5 = vld [vmem:[%s6248_s11 + $0xe8] sm:$0xf0]  ;;  %v4350_v8 = vld [vmem:[%s6248_s11 + $0x60] sm:$0xf] }
 0x305   : > { %v1739_v12 = vpop.f32.mrf.mxu2  ;;  %v1750_v13 = vpack.c.bf16 %v1749_v11, %v1749_v11  ;;  %v4278_v11 = vld [vmem:[%s6248_s11 + $0xd0] sm:$0xf] }
 0x306   : > { %2307 = vmatpush.bf16.msrb.mxu2 %v4287_v9  ;;  %v4973_v12 = vld [vmem:[%s6248_s11 + $0xd4] sm:$0xf0]  ;;  %v4959_v9 = vld [vmem:[%s6248_s11 + $0x64] sm:$0xf0] }
 0x307   : > { %v1758_v14 = vsel %vm1756_vm5, %v1750_v13, 0  ;;  %v4956_v13 = vld [vmem:[%s6248_s11 + $0x54] sm:$0xf] }
 0x308   : > { %1767 = vmatpush.bf16.msra.mxu3 %v1758_v14  ;;  %1802 = vmatpush.bf16.msrb.mxu0 %v1758_v14 }
 0x30b   : > { %4034 = vmatmul.msk.bf16.vlgmr.msra.gmra.mxu3 %vm1752_vm6, %v1751_v15  ;;  %4036 = vmatmul.msk.bf16.vlgmr.msrb.gmra.mxu0 %vm1752_vm6, %v4035_v16  ;;  %v4344_v15 = vld [vmem:[%s6248_s11 + $0x58] sm:$0xf0] }
 0x30c   : > { %1960 = vmatpush.bf16.msra.mxu0 %v1758_v14  ;;  %1935 = vmatpush.bf16.msrb.mxu3 %v4921_v18  ;;  %v4347_v16 = vor.u32 %v4956_v13, %v4344_v15  ;;  %v4971_v18 = vld [vmem:[%s6248_s11 + $0xc4] sm:$0xf0]  ;;  %v4972_v13 = vld [vmem:[%s6248_s11 + $0xd4] sm:$0xf]  ;;  %v4280_v15 = vld [vmem:[%s6248_s11 + $0xd8] sm:$0xf0] }
 0x310   : > { %2058 = vmatpush.bf16.msrb.mxu0 %v1758_v14  ;;  %1936 = vmatpush.bf16.msrb.mxu3 %v4920_v20  ;;  %v4279_v14 = vor.u32 %v4973_v12, %v4278_v11  ;;  %v4271_v20 = vor.u32 %v4971_v18, %v4270_v17  ;;  %v4218_v11 = vld [vmem:[%s6247_s10 + $0x4] sm:$0xf]  ;;  %v4291_v12 = vor.u32 %v4974_v4, %v4288_v5  ;;  %v4957_v17 = vld [vmem:[%s6248_s11 + $0x54] sm:$0xf0] }
 0x311   : > { %v4283_v18 = vor.u32 %v4972_v13, %v4280_v15  ;;  %v5005_v15 = vld [vmem:[%s6248_s11 + $0x1d4] sm:$0xf0] }
 0x312   : > { %2308 = vmatpush.bf16.msrb.mxu2 %v4279_v14  ;;  %v4351_v14 = vor.u32 %v4959_v9, %v4350_v8  ;;  %v4514_v8 = vld [vmem:[%s6248_s11 + $0x1e0] sm:$0xf]  ;;  %v5007_v9 = vld [vmem:[%s6248_s11 + $0x1e4] sm:$0xf0] }
 0x313   : > { %v4515_v13 = vor.u32 %v5007_v9, %v4514_v8  ;;  %v4997_v8 = vld [vmem:[%s6248_s11 + $0x194] sm:$0xf0] }
 0x314   : > { %1937 = vmatpush.bf16.msrb.mxu3 %v4919_v24  ;;  %v4969_v24 = vld [vmem:[%s6248_s11 + $0xb4] sm:$0xf0] }
 0x315   : > { %v4263_v26 = vor.u32 %v4969_v24, %v4262_v23  ;;  %v4955_v23 = vld [vmem:[%s6248_s11 + $0x44] sm:$0xf0]  ;;  %v4275_v24 = vor.u32 %v4970_v19, %v4272_v21  ;;  %v5006_v19 = vld [vmem:[%s6248_s11 + $0x1e4] sm:$0xf] }
 0x316   : > { %2309 = vmatpush.bf16.msrb.mxu2 %v4271_v20 }
 0x318   : > { %1938 = vmatpush.bf16.msrb.mxu3 %v4918_v27  ;;  %v4328_v27 = vld [vmem:[%s6248_s11 + $0x38] sm:$0xf0] }
 0x31a   : > { %2310 = vmatpush.bf16.msrb.mxu2 %v4263_v26 }
 0x31b   : > { %4118 = vmatmul.msk.bf16.vlgmr.msra.gmra.mxu0 %vm1752_vm6, %v4117_v28  ;;  %v4331_v28 = vor.u32 %v4952_v25, %v4328_v27  ;;  %v4968_v25 = vld [vmem:[%s6248_s11 + $0xb4] sm:$0xf]  ;;  %v4264_v27 = vld [vmem:[%s6248_s11 + $0xb8] sm:$0xf0] }
 0x31c   : > { %1939 = vmatpush.bf16.msrb.mxu3 %v4917_v30  ;;  %v4254_v30 = vld [vmem:[%s6248_s11 + $0xa0] sm:$0xf] }
 0x31d   : > { %v4255_v33 = vor.u32 %v4967_v31, %v4254_v30  ;;  %v4267_v30 = vor.u32 %v4968_v25, %v4264_v27  ;;  %v4966_v31 = vld [vmem:[%s6248_s11 + $0xa4] sm:$0xf]  ;;  %v4508_v25 = vld [vmem:[%s6248_s11 + $0x1d8] sm:$0xf0] }
 0x31f   : > { %2311 = vmatpush.bf16.msrb.mxu2 %v4255_v33  ;;  %v4256_v33 = vld [vmem:[%s6248_s11 + $0xa8] sm:$0xf0] }
 0x320   : > { %1940 = vmatpush.bf16.msrb.mxu3 %v4916_v32  ;;  %v4950_v32 = vld [vmem:[%s6248_s11 + $0x24] sm:$0xf] }
 0x324   : > { %1941 = vmatpush.bf16.msrb.mxu3 %v4915_v37  ;;  %v4965_v37 = vld [vmem:[%s6248_s11 + $0x94] sm:$0xf0] }
 0x325   : > { %v4247_v39 = vor.u32 %v4965_v37, %v4246_v36  ;;  %v4259_v36 = vor.u32 %v4966_v31, %v4256_v33  ;;  %v4987_v31 = vld [vmem:[%s6248_s11 + $0x144] sm:$0xf0] }
 0x327   : > { %2312 = vmatpush.bf16.msrb.mxu2 %v4247_v39  ;;  %v4248_v39 = vld [vmem:[%s6248_s11 + $0x98] sm:$0xf0] }
 0x328   : > { %1942 = vmatpush.bf16.msrb.mxu3 %v4914_v40  ;;  %v4312_v40 = vld [vmem:[%s6248_s11 + $0x18] sm:$0xf0] }
 0x329   : > { %v4315_v41 = vor.u32 %v4948_v38, %v4312_v40  ;;  %v4964_v38 = vld [vmem:[%s6248_s11 + $0x94] sm:$0xf] }
 0x32a   : > { %v4251_v40 = vor.u32 %v4964_v38, %v4248_v39  ;;  %v5002_v39 = vld [vmem:[%s6248_s11 + $0x1c4] sm:$0xf] }
 0x32b   : > { %4168 = vmatmul.msk.bf16.vlgmr.msrb.gmra.mxu0 %vm1752_vm6, %v4167_v34  ;;  %v4320_v34 = vld [vmem:[%s6248_s11 + $0x28] sm:$0xf0]  ;;  %2313 = vmatpush.bf16.msrb.mxu2 %v4239_v46  ;;  %v4311_v46 = vor.u32 %v4949_v45, %v4310_v44  ;;  %v4984_v44 = vld [vmem:[%s6248_s11 + $0x134] sm:$0xf] }
 0x32c   : > { %v4323_v35 = vor.u32 %v4950_v32, %v4320_v34  ;;  %v4318_v34 = vld [vmem:[%s6248_s11 + $0x20] sm:$0xf] }
 0x388   : > { %v1804_v51 = vpop.f32.mrf.mxu0 }
 0x389   : > { %v1808_v52 = vpack.c.bf16 %v1804_v51, %v1804_v51 }
 0x38b   : > { %1882 = vmatmul.bf16.vlgmr.msrb.gmra.mxu1 %v1808_v52 }
 0x38c   : > { %2425 = vmatpush.bf16.msrb.mxu1 %v4363_v6 }
 0x38e   : > { %v1769_v53 = vpop.f32.mrf.mxu3 }
 0x38f   : > { %v1773_v54 = vpack.c.bf16 %v1769_v53, %v1769_v53 }
 0x390   : > { %v1806_v55 = vpop.f32.mrf.mxu0  ;;  %2426 = vmatpush.bf16.msrb.mxu1 %v4355_v10  ;;  %v2153_v10 = vld [vmem:[%s6247_s10] sm:$0xf] }
 0x391   : > { %1943 = vmatmul.bf16.vlgmr.msrb.gmra.mxu3 %v1773_v54  ;;  %v5068_v55 = vld [vmem:[%s6246_s9] ss:$0 sm:$0xff] }
 0x394   : > { %2427 = vmatpush.bf16.msrb.mxu1 %v4347_v16  ;;  %v4342_v16 = vld [vmem:[%s6248_s11 + $0x50] sm:$0xf] }
 0x395   : > { %v4343_v20 = vor.u32 %v4957_v17, %v4342_v16 }
 0x396   : > { %v1771_v56 = vpop.f32.mrf.mxu3 }
 0x398   : > { %v1962_v57 = vpop.f32.mrf.mxu0  ;;  %2428 = vmatpush.bf16.msrb.mxu1 %v4339_v22  ;;  %v4334_v22 = vld [vmem:[%s6248_s11 + $0x40] sm:$0xf] }
 0x399   : > { %v1966_v58 = vpack.c.bf16 %v1962_v57, %v1962_v57  ;;  %v4335_v26 = vor.u32 %v4955_v23, %v4334_v22 }
 0x39b   : > { %2040 = vmatmul.bf16.vlgmr.msra.gmra.mxu2 %v1966_v58 }
 0x39c   : > { %2429 = vmatpush.bf16.msrb.mxu1 %v4331_v28  ;;  %v4326_v28 = vld [vmem:[%s6248_s11 + $0x30] sm:$0xf] }
 0x3a0   : > { %v1964_v59 = vpop.f32.mrf.mxu0  ;;  %2430 = vmatpush.bf16.msrb.mxu1 %v4323_v35  ;;  %v4951_v35 = vld [vmem:[%s6248_s11 + $0x24] sm:$0xf0] }
 0x3a1   : > { %v4319_v37 = vor.u32 %v4951_v35, %v4318_v34  ;;  %v4418_v34 = vld [vmem:[%s6248_s11 + $0x148] sm:$0xf0]  ;;  %v4498_v35 = vld [vmem:[%s6248_s11 + $0x1c0] sm:$0xf] }
 0x3a4   : > { %2431 = vmatpush.bf16.msrb.mxu1 %v4315_v41  ;;  %v4962_v41 = vld [vmem:[%s6248_s11 + $0x84] sm:$0xf] }
 0x3a8   : > { %v2060_v60 = vpop.f32.mrf.mxu0  ;;  %2432 = vmatpush.bf16.msrb.mxu1 %v4307_v48  ;;  %v4947_v48 = vld [vmem:[%s6248_s11 + $0x4] sm:$0xf0] }
 0x3a9   : > { %v2064_v61 = vpack.c.bf16 %v2060_v60, %v2060_v60  ;;  %v4976_v60 = vld [vmem:[%s6248_s11 + $0xf4] sm:$0xf] }
 0x3ab   : > { %2138 = vmatmul.bf16.vlgmr.msra.gmra.mxu1 %v2064_v61  ;;  %v4296_v61 = vld [vmem:[%s6248_s11 + $0xf8] sm:$0xf0] }
 0x3ac   : > { %v4299_v3 = vor.u32 %v4976_v60, %v4296_v61  ;;  %v4522_v60 = vld [vmem:[%s6248_s11 + $0x1f0] sm:$0xf]  ;;  %v5009_v61 = vld [vmem:[%s6248_s11 + $0x1f4] sm:$0xf0] }
 0x3ad   : > { %v4523_v5 = vor.u32 %v5009_v61, %v4522_v60  ;;  %v4999_v60 = vld [vmem:[%s6248_s11 + $0x1a4] sm:$0xf0] }
 0x3b0   : > { %v2062_v62 = vpop.f32.mrf.mxu0 }
 0x3b1   : > { %v4358_v62 = vld [vmem:[%s6248_s11 + $0x70] sm:$0xf] }
 0x3b2   : > { %v4359_v6 = vor.u32 %v4961_v63, %v4358_v62 }
 0x408   : > { %v1883_v29 = vpop.f32.mrf.mxu1 }
 0x410   : > { %v1885_v42 = vpop.f32.mrf.mxu1 }
 0x411   : > { %v4240_v42 = vld [vmem:[%s6248_s11 + $0x88] sm:$0xf0] }
 0x412   : > { %v4243_v43 = vor.u32 %v4962_v41, %v4240_v42  ;;  %v4408_v42 = vld [vmem:[%s6248_s11 + $0x130] sm:$0xf] }
 0x414   : > { %v1944_v49 = vpop.f32.mrf.mxu3 }
 0x415   : > { %v1945_v52 = vadd.f32 %v1944_v49, %v1883_v29  ;;  %v4953_v29 = vld [vmem:[%s6248_s11 + $0x34] sm:$0xf0]  ;;  %v4303_v49 = vor.u32 %v4947_v48, %v4302_v47  ;;  %v4490_v47 = vld [vmem:[%s6248_s11 + $0x1b0] sm:$0xf] }
 0x416   : > { %v4327_v32 = vor.u32 %v4953_v29, %v4326_v28  ;;  %v4364_v28 = vld [vmem:[%s6247_s10 + $0x8] sm:$0xf]  ;;  %v4446_v29 = vld [vmem:[%s6247_s10 + $0xc] sm:$0xf]  ;;  %v5001_v48 = vld [vmem:[%s6248_s11 + $0x1b4] sm:$0xf0] }
 0x41c   : > { %v1946_v50 = vpop.f32.mrf.mxu3 }
 0x41d   : > { %v4440_v50 = vld [vmem:[%s6248_s11 + $0x170] sm:$0xf] }
 0x41e   : > { %v2041_v51 = vpop.f32.mrf.mxu2 }
 0x41f   : > { %v2045_v54 = vadd.f32 %v2041_v51, %v1945_v52  ;;  %v4993_v51 = vld [vmem:[%s6248_s11 + $0x174] sm:$0xf0]  ;;  %v4992_v52 = vld [vmem:[%s6248_s11 + $0x174] sm:$0xf] }
 0x426   : > { %v2043_v53 = vpop.f32.mrf.mxu2 }
 0x427   : > { %v4441_v53 = vor.u32 %v4993_v51, %v4440_v50  ;;  %v4491_v50 = vor.u32 %v5001_v48, %v4490_v47  ;;  %v5000_v51 = vld [vmem:[%s6248_s11 + $0x1b4] sm:$0xf] }
 0x428   : > { %v2139_v56 = vpop.f32.mrf.mxu1 }
 0x429   : > { %v2143_v57 = vadd.f32 %v2139_v56, %v2045_v54  ;;  %v4442_v54 = vld [vmem:[%s6248_s11 + $0x178] sm:$0xf0]  ;;  %v4432_v56 = vld [vmem:[%s6248_s11 + $0x160] sm:$0xf] }
 0x42b   : > { %v2148_v58 = vadd.f32 %v5068_v55, %v2143_v57  ;;  %v4445_v55 = vor.u32 %v4992_v52, %v4442_v54  ;;  %v4991_v57 = vld [vmem:[%s6248_s11 + $0x164] sm:$0xf0]  ;;  %v4492_v52 = vld [vmem:[%s6248_s11 + $0x1b8] sm:$0xf0]  ;;  %v4400_v54 = vld [vmem:[%s6248_s11 + $0x120] sm:$0xf] }
 0x42c   : > { %v4433_v62 = vor.u32 %v4991_v57, %v4432_v56  ;;  %v4982_v56 = vld [vmem:[%s6248_s11 + $0x124] sm:$0xf] }
 0x42d   : > { %vm2149_vm7 = vcmp.ge.f32.partialorder %v2148_v58, 0.0  ;;  %v2150_v59 = vmul.f32 0.2, %v2148_v58 }
 0x42f   : > { %v2151_v0 = vsel %vm2149_vm7, %v2148_v58, %v2150_v59  ;;  %v4990_v58 = vld [vmem:[%s6248_s11 + $0x164] sm:$0xf]  ;;  %v4434_v59 = vld [vmem:[%s6248_s11 + $0x168] sm:$0xf0] }
 0x430   : > { %v2141_v1 = vpop.f32.mrf.mxu1  ;;  %v2152_v2 = vpack.c.bf16 %v2151_v0, %v2151_v0  ;;  %v4437_v63 = vor.u32 %v4990_v58, %v4434_v59  ;;  %v4424_v0 = vld [vmem:[%s6248_s11 + $0x150] sm:$0xf]  ;;  %v4402_v58 = vld [vmem:[%s6248_s11 + $0x128] sm:$0xf0]  ;;  %v4482_v59 = vld [vmem:[%s6248_s11 + $0x1a0] sm:$0xf] }
 0x431   : > { %v4989_v1 = vld [vmem:[%s6248_s11 + $0x154] sm:$0xf0]  ;;  %v4405_v61 = vor.u32 %v4982_v56, %v4402_v58 }
 0x432   : > { %v2158_v7 = vsel %vm1756_vm5, %v2152_v2, 0  ;;  %v4988_v2 = vld [vmem:[%s6248_s11 + $0x154] sm:$0xf] }
 0x433   : > { %2167 = vmatpush.bf16.msra.mxu3 %v2158_v7  ;;  %2202 = vmatpush.bf16.msra.mxu0 %v2158_v7 }
 0x434   : > { %2450 = vmatpush.bf16.msra.mxu2 %v2158_v7  ;;  %2594 = vmatpush.bf16.msra.mxu1 %v2158_v7 }
 0x436   : > { %4217 = vmatmul.msk.bf16.vlgmr.msra.gmra.mxu3 %vm1752_vm6, %v2153_v10  ;;  %4219 = vmatmul.msk.bf16.vlgmr.msra.gmra.mxu0 %vm1752_vm6, %v4218_v11  ;;  %v5008_v11 = vld [vmem:[%s6248_s11 + $0x1f4] sm:$0xf] }
 0x437   : > { %2319 = vmatpush.bf16.msrb.mxu3 %v4299_v3  ;;  %2412 = vmatpush.bf16.msrb.mxu0 %v4359_v6  ;;  %v4426_v3 = vld [vmem:[%s6248_s11 + $0x158] sm:$0xf0]  ;;  %v4425_v6 = vor.u32 %v4989_v1, %v4424_v0  ;;  %v4484_v0 = vld [vmem:[%s6248_s11 + $0x1a8] sm:$0xf0] }
 0x438   : > { %v4429_v10 = vor.u32 %v4988_v2, %v4426_v3  ;;  %v4392_v2 = vld [vmem:[%s6248_s11 + $0x110] sm:$0xf]  ;;  %v4981_v3 = vld [vmem:[%s6248_s11 + $0x114] sm:$0xf0] }
 0x43b   : > { %2320 = vmatpush.bf16.msrb.mxu3 %v4291_v12  ;;  %2413 = vmatpush.bf16.msrb.mxu0 %v4351_v14  ;;  %v4524_v12 = vld [vmem:[%s6248_s11 + $0x1f8] sm:$0xf0]  ;;  %v4506_v14 = vld [vmem:[%s6248_s11 + $0x1d0] sm:$0xf] }
 0x43c   : > { %v4527_v17 = vor.u32 %v5008_v11, %v4524_v12  ;;  %v4507_v22 = vor.u32 %v5005_v15, %v4506_v14  ;;  %v4996_v11 = vld [vmem:[%s6248_s11 + $0x194] sm:$0xf]  ;;  %v4476_v12 = vld [vmem:[%s6248_s11 + $0x198] sm:$0xf0]  ;;  %v4384_v14 = vld [vmem:[%s6248_s11 + $0x100] sm:$0xf] }
 0x43d   : > { %v4979_v15 = vld [vmem:[%s6248_s11 + $0x104] sm:$0xf0] }
 0x43f   : > { %2321 = vmatpush.bf16.msrb.mxu3 %v4283_v18  ;;  %2414 = vmatpush.bf16.msrb.mxu0 %v4343_v20  ;;  %v4516_v20 = vld [vmem:[%s6248_s11 + $0x1e8] sm:$0xf0] }
 0x440   : > { %v4519_v23 = vor.u32 %v5006_v19, %v4516_v20  ;;  %v4466_v19 = vld [vmem:[%s6248_s11 + $0x180] sm:$0xf]  ;;  %v4995_v20 = vld [vmem:[%s6248_s11 + $0x184] sm:$0xf0] }
 0x443   : > { %2322 = vmatpush.bf16.msrb.mxu3 %v4275_v24  ;;  %2415 = vmatpush.bf16.msrb.mxu0 %v4335_v26  ;;  %v5004_v24 = vld [vmem:[%s6248_s11 + $0x1d4] sm:$0xf] }
 0x444   : > { %v4511_v27 = vor.u32 %v5004_v24, %v4508_v25  ;;  %v4468_v24 = vld [vmem:[%s6248_s11 + $0x188] sm:$0xf0] }
 0x447   : > { %2323 = vmatpush.bf16.msrb.mxu3 %v4267_v30  ;;  %2416 = vmatpush.bf16.msrb.mxu0 %v4327_v32  ;;  %v4416_v30 = vld [vmem:[%s6248_s11 + $0x140] sm:$0xf]  ;;  %v4986_v32 = vld [vmem:[%s6248_s11 + $0x144] sm:$0xf] }
 0x448   : > { %v4417_v33 = vor.u32 %v4987_v31, %v4416_v30 }
 0x44b   : > { %2324 = vmatpush.bf16.msrb.mxu3 %v4259_v36  ;;  %2417 = vmatpush.bf16.msrb.mxu0 %v4319_v37  ;;  %v5003_v36 = vld [vmem:[%s6248_s11 + $0x1c4] sm:$0xf0]  ;;  %v4421_v37 = vor.u32 %v4986_v32, %v4418_v34 }
 0x44c   : > { %v4499_v38 = vor.u32 %v5003_v36, %v4498_v35 }
 0x44f   : > { %2325 = vmatpush.bf16.msrb.mxu3 %v4251_v40  ;;  %2418 = vmatpush.bf16.msrb.mxu0 %v4311_v46  ;;  %v4500_v40 = vld [vmem:[%s6248_s11 + $0x1c8] sm:$0xf0]  ;;  %v4410_v46 = vld [vmem:[%s6248_s11 + $0x138] sm:$0xf0] }
 0x450   : > { %v4503_v41 = vor.u32 %v5002_v39, %v4500_v40 }
 0x453   : > { %2326 = vmatpush.bf16.msrb.mxu3 %v4243_v43  ;;  %2419 = vmatpush.bf16.msrb.mxu0 %v4303_v49  ;;  %v4985_v43 = vld [vmem:[%s6248_s11 + $0x134] sm:$0xf0]  ;;  %v4413_v49 = vor.u32 %v4984_v44, %v4410_v46  ;;  %v5031_v44 = vld [vmem:[%s6251_s14 + $0xa8] sm:$0xff]  ;;  %v2726_v46 = vld [vmem:[%s6249_s12] sm:$0x3] }
 0x454   : > { %v4409_v45 = vor.u32 %v4985_v43, %v4408_v42  ;;  %v5033_v42 = vld [vmem:[%s6251_s14 + $0xb8] sm:$0xff]  ;;  %v5032_v43 = vld [vmem:[%s6251_s14 + $0xb0] sm:$0xff] }
 0x457   : > { %2554 = vmatpush.bf16.msra.mxu3 %v4441_v53  ;;  %2567 = vmatpush.bf16.msra.mxu0 %v4445_v55  ;;  %v4495_v53 = vor.u32 %v5000_v51, %v4492_v52  ;;  %v4983_v55 = vld [vmem:[%s6248_s11 + $0x124] sm:$0xf0] }
 0x458   : > { %v4401_v57 = vor.u32 %v4983_v55, %v4400_v54 }
 0x45b   : > { %2555 = vmatpush.bf16.msra.mxu3 %v4433_v62  ;;  %2568 = vmatpush.bf16.msra.mxu0 %v4437_v63  ;;  %v4483_v62 = vor.u32 %v4999_v60, %v4482_v59  ;;  %v4998_v63 = vld [vmem:[%s6248_s11 + $0x1a4] sm:$0xf] }
 0x45c   : > { %v4487_v1 = vor.u32 %v4998_v63, %v4484_v0 }
 0x45f   : > { %2556 = vmatpush.bf16.msra.mxu3 %v4425_v6  ;;  %2569 = vmatpush.bf16.msra.mxu0 %v4429_v10  ;;  %v4394_v6 = vld [vmem:[%s6248_s11 + $0x118] sm:$0xf0] }
 0x463   : > { %2557 = vmatpush.bf16.msra.mxu3 %v4417_v33  ;;  %2570 = vmatpush.bf16.msra.mxu0 %v4421_v37 }
 0x467   : > { %2558 = vmatpush.bf16.msra.mxu3 %v4409_v45  ;;  %2571 = vmatpush.bf16.msra.mxu0 %v4413_v49  ;;  %v5030_v45 = vld [vmem:[%s6251_s14 + $0xa0] sm:$0xff] }
 0x46b   : > { %2559 = vmatpush.bf16.msra.mxu3 %v4401_v57  ;;  %2572 = vmatpush.bf16.msra.mxu0 %v4405_v61  ;;  %v2728_v57 = vperm.slane %v2726_v46, 0 }
 0x4b3   : > { %v2204_v4 = vpop.f32.mrf.mxu0 }
 0x4b4   : > { %v2208_v7 = vpack.c.bf16 %v2204_v4, %v2204_v4  ;;  %v4980_v4 = vld [vmem:[%s6248_s11 + $0x114] sm:$0xf] }
 0x4b5   : > { %v4397_v9 = vor.u32 %v4980_v4, %v4394_v6 }
 0x4b6   : > { %2314 = vmatmul.bf16.vlgmr.msrb.gmra.mxu2 %v2208_v7  ;;  %2327 = vmatmul.bf16.vlgmr.msrb.gmra.mxu3 %v2208_v7  ;;  %v4474_v7 = vld [vmem:[%s6248_s11 + $0x190] sm:$0xf] }
 0x4b7   : > { %2698 = vmatpush.bf16.msrb.mxu2 %v4523_v5  ;;  %v4393_v5 = vor.u32 %v4981_v3, %v4392_v2  ;;  %v4475_v10 = vor.u32 %v4997_v8, %v4474_v7  ;;  %2573 = vmatpush.bf16.msra.mxu0 %v4397_v9  ;;  %v2742_v2 = vld [vmem:[%s6250_s13] sm:$0xf]  ;;  %v5017_v7 = vld [vmem:[%s6251_s14 + $0x38] sm:$0xff] }
 0x4b8   : > { %v5021_v9 = vld [vmem:[%s6251_s14 + $0x58] sm:$0xff] }
 0x4b9   : > { %v2169_v16 = vpop.f32.mrf.mxu3  ;;  %2560 = vmatpush.bf16.msra.mxu3 %v4393_v5 }
 0x4ba   : > { %v2173_v18 = vpack.c.bf16 %v2169_v16, %v2169_v16  ;;  %v4978_v16 = vld [vmem:[%s6248_s11 + $0x104] sm:$0xf] }
 0x4bb   : > { %v2206_v21 = vpop.f32.mrf.mxu0  ;;  %2699 = vmatpush.bf16.msrb.mxu2 %v4515_v13  ;;  %v4479_v13 = vor.u32 %v4996_v11, %v4476_v12  ;;  %v5016_v11 = vld [vmem:[%s6251_s14 + $0x30] sm:$0xff] }
 0x4bc   : > { %2420 = vmatmul.bf16.vlgmr.msrb.gmra.mxu0 %v2173_v18  ;;  %2433 = vmatmul.bf16.vlgmr.msrb.gmra.mxu1 %v2173_v18  ;;  %v4386_v18 = vld [vmem:[%s6248_s11 + $0x108] sm:$0xf0]  ;;  %v5020_v12 = vld [vmem:[%s6251_s14 + $0x50] sm:$0xff] }
 0x4bd   : > { %2711 = vmatpush.bf16.msrb.mxu1 %v4527_v17  ;;  %v4385_v17 = vor.u32 %v4979_v15, %v4384_v14  ;;  %v4389_v21 = vor.u32 %v4978_v16, %v4386_v18  ;;  %v5019_v14 = vld [vmem:[%s6251_s14 + $0x48] sm:$0xff]  ;;  %v5014_v15 = vld [vmem:[%s6251_s14 + $0x20] sm:$0xff]  ;;  %v5012_v18 = vld [vmem:[%s6251_s14 + $0x10] sm:$0xff] }
 0x4be   : > { %v5018_v16 = vld [vmem:[%s6251_s14 + $0x40] sm:$0xff] }
 0x4bf   : > { %2700 = vmatpush.bf16.msrb.mxu2 %v4507_v22  ;;  %v4467_v22 = vor.u32 %v4995_v20, %v4466_v19  ;;  %2561 = vmatpush.bf16.msra.mxu3 %v4385_v17  ;;  %v5013_v17 = vld [vmem:[%s6251_s14 + $0x18] sm:$0xff]  ;;  %v5011_v19 = vld [vmem:[%s6251_s14 + $0x8] sm:$0xff]  ;;  %v5010_v20 = vld [vmem:[%s6251_s14] sm:$0xff] }
 0x4c0   : > { %2574 = vmatpush.bf16.msra.mxu0 %v4389_v21  ;;  %v5029_v21 = vld [vmem:[%s6251_s14 + $0x98] sm:$0xff] }
 0x4c1   : > { %v2171_v26 = vpop.f32.mrf.mxu3  ;;  %2712 = vmatpush.bf16.msrb.mxu1 %v4519_v23  ;;  %v4994_v23 = vld [vmem:[%s6248_s11 + $0x184] sm:$0xf] }
 0x4c2   : > { %v4471_v25 = vor.u32 %v4994_v23, %v4468_v24  ;;  %v5027_v23 = vld [vmem:[%s6251_s14 + $0x88] sm:$0xff]  ;;  %v5026_v24 = vld [vmem:[%s6251_s14 + $0x80] sm:$0xff] }
 0x4c3   : > { %2701 = vmatpush.bf16.msrb.mxu2 %v4499_v38 }
 0x4c5   : > { %2713 = vmatpush.bf16.msrb.mxu1 %v4511_v27 }
 0x4c6   : > { %4365 = vmatmul.msk.bf16.vlgmr.msra.gmra.mxu2 %vm1752_vm6, %v4364_v28 }
 0x4c7   : > { %2702 = vmatpush.bf16.msrb.mxu2 %v4491_v50  ;;  %v2729_v50 = vperm.slane %v2726_v46, 1  ;;  %v5042_v46 = vld [vmem:[%s6251_s14 + $0x100] sm:$0xff] }
 0x4c9   : > { %2714 = vmatpush.bf16.msrb.mxu1 %v4503_v41 }
 0x4cb   : > { %2703 = vmatpush.bf16.msrb.mxu2 %v4483_v62 }
 0x4cc   : > { %4447 = vmatmul.msk.bf16.vlgmr.msra.gmra.mxu1 %vm1752_vm6, %v4446_v29 }
 0x4cd   : > { %2715 = vmatpush.bf16.msrb.mxu1 %v4495_v53 }
 0x4cf   : > { %2704 = vmatpush.bf16.msrb.mxu2 %v4475_v10  ;;  %v4530_v10 = vld [vmem:[%s6250_s13 + $0x4] sm:$0xf] }
 0x4d1   : > { %2716 = vmatpush.bf16.msrb.mxu1 %v4487_v1 }
 0x4d3   : > { %2705 = vmatpush.bf16.msrb.mxu2 %v4467_v22  ;;  %v5028_v22 = vld [vmem:[%s6251_s14 + $0x90] sm:$0xff] }
 0x4d5   : > { %2717 = vmatpush.bf16.msrb.mxu1 %v4479_v13  ;;  %v5015_v13 = vld [vmem:[%s6251_s14 + $0x28] sm:$0xff] }
 0x4d9   : > { %2718 = vmatpush.bf16.msrb.mxu1 %v4471_v25  ;;  %v5025_v25 = vld [vmem:[%s6251_s14 + $0x78] sm:$0xff] }
 0x4dd   : > { %2955 = vmatpush.bf16.msra.mxu1 %v5033_v42 }
 0x4e1   : > { %2956 = vmatpush.bf16.msra.mxu1 %v5032_v43 }
 0x4e5   : > { %2957 = vmatpush.bf16.msra.mxu1 %v5031_v44  ;;  %v5044_v44 = vld [vmem:[%s6251_s14 + $0x110] sm:$0xff] }
 0x4e9   : > { %2958 = vmatpush.bf16.msra.mxu1 %v5030_v45  ;;  %v5043_v45 = vld [vmem:[%s6251_s14 + $0x108] sm:$0xff] }
 0x539   : > { %v2315_v26 = vpop.f32.mrf.mxu2  ;;  %v2328_v27 = vpop.f32.mrf.mxu3 }
 0x53a   : > { %v2421_v28 = vpop.f32.mrf.mxu0  ;;  %v2434_v29 = vpop.f32.mrf.mxu1 }
 0x53b   : > { %v2422_v30 = vadd.f32 %v2421_v28, %v2315_v26  ;;  %v2435_v31 = vadd.f32 %v2434_v29, %v2328_v27  ;;  %v5024_v26 = vld [vmem:[%s6251_s14 + $0x70] sm:$0xff]  ;;  %v5023_v27 = vld [vmem:[%s6251_s14 + $0x68] sm:$0xff]  ;;  %v5022_v28 = vld [vmem:[%s6251_s14 + $0x60] sm:$0xff] }
 0x541   : > { %v2317_v32 = vpop.f32.mrf.mxu2  ;;  %v2330_v33 = vpop.f32.mrf.mxu3 }
 0x542   : > { %v2423_v34 = vpop.f32.mrf.mxu0  ;;  %v2436_v35 = vpop.f32.mrf.mxu1 }
 0x549   : > { %v2452_v36 = vpop.f32.mrf.mxu2 }
 0x54a   : > { %v2456_v37 = vpack.c.bf16 %v2452_v36, %v2452_v36  ;;  %v2596_v38 = vpop.f32.mrf.mxu1  ;;  %v4655_v36 = vld [vmem:[%s6250_s13 + $0x8] sm:$0xf] }
 0x54b   : > { %v2600_v39 = vpack.c.bf16 %v2596_v38, %v2596_v38 }
 0x54c   : > { %2562 = vmatmul.bf16.vlgmr.msra.gmra.mxu3 %v2456_v37  ;;  %2575 = vmatmul.bf16.vlgmr.msra.gmra.mxu0 %v2456_v37 }
 0x54d   : > { %2706 = vmatmul.bf16.vlgmr.msrb.gmra.mxu2 %v2600_v39  ;;  %2719 = vmatmul.bf16.vlgmr.msrb.gmra.mxu1 %v2600_v39 }
 0x551   : > { %v2454_v40 = vpop.f32.mrf.mxu2 }
 0x552   : > { %v2598_v41 = vpop.f32.mrf.mxu1  ;;  %v4731_v40 = vld [vmem:[%s6250_s13 + $0xc] sm:$0xf] }
 0x553   : > { %v5045_v41 = vld [vmem:[%s6251_s14 + $0x118] sm:$0xff] }
 0x5c9   : > { %v2576_v47 = vpop.f32.mrf.mxu0 }
 0x5ca   : > { %v2581_v48 = vadd.f32 %v2576_v47, %v2435_v31  ;;  %v2720_v49 = vpop.f32.mrf.mxu1  ;;  %v5053_v47 = vld [vmem:[%s6251_s14 + $0x158] sm:$0xff] }
 0x5cc   : > { %v2725_v51 = vadd.f32 %v2720_v49, %v2581_v48  ;;  %v5052_v48 = vld [vmem:[%s6251_s14 + $0x150] sm:$0xff]  ;;  %v5041_v49 = vld [vmem:[%s6251_s14 + $0xf8] sm:$0xff] }
 0x5ce   : > { %v2733_v52 = vadd.f32 %v2729_v50, %v2725_v51  ;;  %v5040_v50 = vld [vmem:[%s6251_s14 + $0xf0] sm:$0xff]  ;;  %v5051_v51 = vld [vmem:[%s6251_s14 + $0x148] sm:$0xff] }
 0x5cf   : > { %v2563_v53 = vpop.f32.mrf.mxu3 }
 0x5d0   : > { %vm2735_vm8 = vcmp.ge.f32.partialorder %v2733_v52, 0.0  ;;  %v2737_v54 = vmul.f32 0.2, %v2733_v52  ;;  %v2580_v55 = vadd.f32 %v2563_v53, %v2422_v30  ;;  %v2707_v56 = vpop.f32.mrf.mxu2  ;;  %v5039_v53 = vld [vmem:[%s6251_s14 + $0xe8] sm:$0xff] }
 0x5d1   : > { %v2578_v58 = vpop.f32.mrf.mxu0 }
 0x5d2   : > { %v2724_v59 = vadd.f32 %v2707_v56, %v2580_v55  ;;  %v2722_v60 = vpop.f32.mrf.mxu1  ;;  %v2739_v61 = vsel %vm2735_vm8, %v2733_v52, %v2737_v54  ;;  %v5050_v52 = vld [vmem:[%s6251_s14 + $0x140] sm:$0xff]  ;;  %v5057_v54 = vld [vmem:[%s6251_s14 + $0x178] sm:$0xff]  ;;  %v5048_v58 = vld [vmem:[%s6251_s14 + $0x130] sm:$0xff] }
 0x5d3   : > { %v2741_v62 = vpack.c.bf16 %v2739_v61, %v2739_v61  ;;  %v5049_v55 = vld [vmem:[%s6251_s14 + $0x138] sm:$0xff]  ;;  %v5038_v56 = vld [vmem:[%s6251_s14 + $0xe0] sm:$0xff]  ;;  %v5055_v60 = vld [vmem:[%s6251_s14 + $0x168] sm:$0xff] }
 0x5d4   : > { %v2732_v63 = vadd.f32 %v2728_v57, %v2724_v59  ;;  %v5056_v57 = vld [vmem:[%s6251_s14 + $0x170] sm:$0xff]  ;;  %v5037_v59 = vld [vmem:[%s6251_s14 + $0xd8] sm:$0xff]  ;;  %v5047_v61 = vld [vmem:[%s6251_s14 + $0x128] sm:$0xff] }
 0x5d5   : > { %v6064_v0 = vsel %vm1756_vm5, %v2741_v62, 0  ;;  %v5036_v62 = vld [vmem:[%s6251_s14 + $0xd0] sm:$0xff] }
 0x5d6   : > { %vm2734_vm9 = vcmp.ge.f32.partialorder %v2732_v63, 0.0  ;;  %v2736_v1 = vmul.f32 0.2, %v2732_v63  ;;  %2772 = vmatpush.bf16.msrb.mxu0 %v6064_v0 }
 0x5d7   : > { %v2565_v3 = vpop.f32.mrf.mxu3 }
 0x5d8   : > { %v2709_v4 = vpop.f32.mrf.mxu2  ;;  %v2738_v5 = vsel %vm2734_vm9, %v2732_v63, %v2736_v1  ;;  %v5035_v63 = vld [vmem:[%s6251_s14 + $0xc8] sm:$0xff]  ;;  %v5046_v1 = vld [vmem:[%s6251_s14 + $0x120] sm:$0xff] }
 0x5d9   : > { %4529 = vmatmul.msk.bf16.vlgmr.msrb.gmra.mxu0 %vm1752_vm6, %v2742_v2  ;;  %v2740_v6 = vpack.c.bf16 %v2738_v5, %v2738_v5  ;;  %v5034_v3 = vld [vmem:[%s6251_s14 + $0xc0] sm:$0xff] }
 0x5da   : > { %2938 = vmatpush.bf16.msra.mxu0 %v5029_v21 }
 0x5db   : > { %v2747_v8 = vsel %vm1756_vm5, %v2740_v6, 0 }
 0x5dc   : > { %2759 = vmatpush.bf16.msrb.mxu3 %v2747_v8  ;;  %2816 = vmatpush.bf16.msra.mxu2 %v2747_v8 }
 0x5dd   : > { %3077 = vmatpush.bf16.msrb.mxu1 %v2747_v8 }
 0x5de   : > { %2939 = vmatpush.bf16.msra.mxu0 %v5028_v22 }
 0x5df   : > { %4528 = vmatmul.msk.bf16.vlgmr.msrb.gmra.mxu3 %vm1752_vm6, %v2742_v2  ;;  %4531 = vmatmul.msk.bf16.vlgmr.msra.gmra.mxu2 %vm1752_vm6, %v4530_v10 }
 0x5e0   : > { %2829 = vmatpush.bf16.msra.mxu3 %v6064_v0  ;;  %3039 = vmatpush.bf16.msrb.mxu2 %v5017_v7 }
 0x5e2   : > { %2940 = vmatpush.bf16.msra.mxu0 %v5027_v23 }
 0x5e4   : > { %3056 = vmatpush.bf16.msrb.mxu3 %v5021_v9  ;;  %3040 = vmatpush.bf16.msrb.mxu2 %v5016_v11 }
 0x5e6   : > { %2941 = vmatpush.bf16.msra.mxu0 %v5026_v24 }
 0x5e8   : > { %3057 = vmatpush.bf16.msrb.mxu3 %v5020_v12  ;;  %3041 = vmatpush.bf16.msrb.mxu2 %v5015_v13 }
 0x5ea   : > { %2942 = vmatpush.bf16.msra.mxu0 %v5025_v25 }
 0x5ec   : > { %3058 = vmatpush.bf16.msrb.mxu3 %v5019_v14  ;;  %3042 = vmatpush.bf16.msrb.mxu2 %v5014_v15 }
 0x5ee   : > { %2943 = vmatpush.bf16.msra.mxu0 %v5024_v26 }
 0x5ef   : > { %4532 = vmatmul.msk.bf16.vlgmr.msra.gmra.mxu3 %vm1752_vm6, %v4530_v10 }
 0x5f0   : > { %3059 = vmatpush.bf16.msrb.mxu3 %v5018_v16  ;;  %3043 = vmatpush.bf16.msrb.mxu2 %v5013_v17 }
 0x5f2   : > { %2944 = vmatpush.bf16.msra.mxu0 %v5023_v27 }
 0x5f4   : > { %3090 = vmatpush.bf16.msra.mxu3 %v6064_v0  ;;  %3044 = vmatpush.bf16.msrb.mxu2 %v5012_v18 }
 0x5f6   : > { %2945 = vmatpush.bf16.msra.mxu0 %v5022_v28 }
 0x5f8   : > { %3045 = vmatpush.bf16.msrb.mxu2 %v5011_v19 }
 0x5fa   : > { %3198 = vmatpush.bf16.msrb.mxu0 %v5041_v49 }
 0x5fc   : > { %3046 = vmatpush.bf16.msrb.mxu2 %v5010_v20 }
 0x5fe   : > { %3199 = vmatpush.bf16.msrb.mxu0 %v5040_v50 }
 0x600   : > { %3237 = vmatpush.bf16.msra.mxu2 %v2747_v8 }
 0x602   : > { %3200 = vmatpush.bf16.msrb.mxu0 %v5039_v53 }
 0x606   : > { %3201 = vmatpush.bf16.msrb.mxu0 %v5038_v56 }
 0x60a   : > { %3202 = vmatpush.bf16.msrb.mxu0 %v5037_v59 }
 0x60e   : > { %3203 = vmatpush.bf16.msrb.mxu0 %v5036_v62 }
 0x612   : > { %3204 = vmatpush.bf16.msrb.mxu0 %v5035_v63 }
 0x616   : > { %3205 = vmatpush.bf16.msrb.mxu0 %v5034_v3 }
 0x656   : > { %v2774_v29 = vpop.f32.mrf.mxu0 }
 0x657   : > { %v2779_v30 = vpack.c.bf16 %v2774_v29, %v2774_v29 }
 0x659   : > { %4654 = vmatmul.msk.bf16.vlgmr.msrb.gmra.mxu3 %vm2934_vm10, %v2779_v30 }
 0x65a   : > { %3250 = vmatpush.bf16.msrb.mxu3 %v6064_v0  ;;  %v5054_v0 = vld [vmem:[%s6251_s14 + $0x160] sm:$0xff] }
 0x65e   : > { %v2776_v31 = vpop.f32.mrf.mxu0 }
 0x662   : > { %v2761_v32 = vpop.f32.mrf.mxu3  ;;  %v2818_v33 = vpop.f32.mrf.mxu2 }
 0x663   : > { %v2778_v34 = vpack.c.bf16 %v2761_v32, %v2761_v32  ;;  %v2835_v35 = vpack.c.bf16 %v2818_v33, %v2818_v33 }
 0x665   : > { %3047 = vmatmul.bf16.vlgmr.msrb.gmra.mxu2 %v2778_v34  ;;  %2946 = vmatmul.bf16.vlgmr.msra.gmra.mxu0 %v2835_v35  ;;  %v5069_v35 = vld [vmem:[%s6252_s15] ss:$0 sm:$0xff] }
 0x666   : > { %3375 = vmatpush.bf16.msrb.mxu2 %v5057_v54 }
 0x669   : > { %4657 = vmatmul.msk.bf16.vlgmr.msra.gmra.mxu3 %vm1752_vm6, %v4655_v36 }
 0x66a   : > { %v2763_v37 = vpop.f32.mrf.mxu3  ;;  %v2820_v38 = vpop.f32.mrf.mxu2  ;;  %3376 = vmatpush.bf16.msrb.mxu2 %v5056_v57 }
 0x66e   : > { %3377 = vmatpush.bf16.msrb.mxu2 %v5055_v60 }
 0x672   : > { %v2831_v39 = vpop.f32.mrf.mxu3  ;;  %3378 = vmatpush.bf16.msrb.mxu2 %v5054_v0 }
 0x673   : > { %v2836_v42 = vpack.c.bf16 %v2831_v39, %v2831_v39 }
 0x675   : > { %4605 = vmatmul.msk.bf16.vlgmr.msra.gmra.mxu1 %vm2934_vm10, %v2836_v42  ;;  %4732 = vmatmul.msk.bf16.vlgmr.msra.gmra.mxu2 %vm1752_vm6, %v4731_v40 }
 0x676   : > { %3215 = vmatpush.bf16.msra.mxu1 %v5045_v41 }
 0x679   : > { %4733 = vmatmul.msk.bf16.vlgmr.msrb.gmra.mxu3 %vm1752_vm6, %v4731_v40 }
 0x67a   : > { %v2833_v43 = vpop.f32.mrf.mxu3  ;;  %3216 = vmatpush.bf16.msra.mxu1 %v5044_v44 }
 0x67e   : > { %3217 = vmatpush.bf16.msra.mxu1 %v5043_v45 }
 0x682   : > { %3218 = vmatpush.bf16.msra.mxu1 %v5042_v46 }
 0x685   : > { %4656 = vmatmul.msk.bf16.vlgmr.msrb.gmra.mxu1 %vm1752_vm6, %v4655_v36 }
 0x686   : > { %3358 = vmatpush.bf16.msrb.mxu1 %v5053_v47 }
 0x68a   : > { %3359 = vmatpush.bf16.msrb.mxu1 %v5052_v48 }
 0x68e   : > { %3360 = vmatpush.bf16.msrb.mxu1 %v5051_v51 }
 0x692   : > { %3361 = vmatpush.bf16.msrb.mxu1 %v5050_v52 }
 0x696   : > { %3362 = vmatpush.bf16.msrb.mxu1 %v5049_v55 }
 0x69a   : > { %3363 = vmatpush.bf16.msrb.mxu1 %v5048_v58 }
 0x69e   : > { %3364 = vmatpush.bf16.msrb.mxu1 %v5047_v61 }
 0x6a2   : > { %3365 = vmatpush.bf16.msrb.mxu1 %v5046_v1 }
 0x6dc   : > { %v3061_v2 = vpop.f32.mrf.mxu3 }
 0x6e2   : > { %v2947_v4 = vpop.f32.mrf.mxu0 }
 0x6e4   : > { %v3063_v5 = vpop.f32.mrf.mxu3 }
 0x6e8   : > { %v3048_v6 = vpop.f32.mrf.mxu2 }
 0x6ea   : > { %v2949_v7 = vpop.f32.mrf.mxu0 }
 0x6ec   : > { %v3092_v8 = vpop.f32.mrf.mxu3 }
 0x6ed   : > { %v3097_v9 = vpack.c.bf16 %v3092_v8, %v3092_v8 }
 0x6ef   : > { %4730 = vmatmul.msk.bf16.vlgmr.msra.gmra.mxu1 %vm2934_vm10, %v3097_v9 }
 0x6f0   : > { %v3050_v10 = vpop.f32.mrf.mxu2 }
 0x6f2   : > { %v2960_v11 = vpop.f32.mrf.mxu1 }
 0x6f3   : > { %v2961_v12 = vadd.f32 %v2960_v11, %v2947_v4 }
 0x6f4   : > { %v3094_v13 = vpop.f32.mrf.mxu3 }
 0x6f5   : > { %v3049_v14 = vadd.f32 %v3048_v6, %v2961_v12 }
 0x6f7   : > { %v3062_v15 = vadd.f32 %v3061_v2, %v3049_v14 }
 0x6f8   : > { %v3239_v16 = vpop.f32.mrf.mxu2 }
 0x6f9   : > { %v3256_v18 = vpack.c.bf16 %v3239_v16, %v3239_v16 }
 0x6fa   : > { %v2962_v17 = vpop.f32.mrf.mxu1 }
 0x6fc   : > { %v3252_v19 = vpop.f32.mrf.mxu3 }
 0x6fd   : > { %v3257_v20 = vpack.c.bf16 %v3252_v19, %v3252_v19 }
 0x6ff   : > { %4806 = vmatmul.msk.bf16.vlgmr.msrb.gmra.mxu2 %vm2934_vm10, %v3257_v20  ;;  %3366 = vmatmul.bf16.vlgmr.msrb.gmra.mxu1 %v3256_v18 }
 0x700   : > { %v3241_v21 = vpop.f32.mrf.mxu2 }
 0x702   : > { %v3079_v22 = vpop.f32.mrf.mxu1 }
 0x703   : > { %v3096_v23 = vpack.c.bf16 %v3079_v22, %v3079_v22 }
 0x704   : > { %v3254_v24 = vpop.f32.mrf.mxu3 }
 0x705   : > { %3206 = vmatmul.bf16.vlgmr.msrb.gmra.mxu0 %v3096_v23 }
 0x70a   : > { %v3081_v25 = vpop.f32.mrf.mxu1 }
 0x76c   : > { %v3220_v26 = vpop.f32.mrf.mxu1 }
 0x774   : > { %v3222_v27 = vpop.f32.mrf.mxu1 }
 0x77c   : > { %v3367_v28 = vpop.f32.mrf.mxu1 }
 0x782   : > { %v3207_v29 = vpop.f32.mrf.mxu0  ;;  %v3380_v30 = vpop.f32.mrf.mxu2 }
 0x783   : > { %v3221_v31 = vadd.f32 %v3220_v26, %v3207_v29  ;;  %v3381_v32 = vadd.f32 %v3380_v30, %v3367_v28 }
 0x784   : > { %v3369_v33 = vpop.f32.mrf.mxu1 }
 0x785   : > { %v3224_v34 = vadd.f32 %v3221_v31, %v3062_v15 }
 0x787   : > { %v3384_v36 = vadd.f32 %v3381_v32, %v3224_v34 }
 0x789   : > { %v3389_v37 = vadd.f32 %v5069_v35, %v3384_v36 }
 0x78a   : > { %v3209_v38 = vpop.f32.mrf.mxu0  ;;  %v3382_v39 = vpop.f32.mrf.mxu2 }
 0x78b   : > { %3391 = vst.msk [vmem:[%s519_s26] sm:$0xff] %vm3390_vm11, %v3389_v37 }
 0x78c PF: > { %s26_s21 = sadd.s32 1, %s5076_s21  }
 0x78d   : > { %p23_p4 = scmp.ge.s32.totalorder %s26_s21, 4  }
 0x78f   :  { %25 = sbr.rel (!%p23_p4) target bundleno = 2 (0x2), region = 144 }

</bundles_post_ra>
